<compile_context>
chip_gen: v6e
topology: v6e:2x2x1
jax: 0.10.0
libtpu: 0.0.40
codegen_flags: <defaults>
</compile_context>

<pallas_src>
import functools

import jax
import jax.numpy as jnp
from jax.experimental import pallas as pl
from jax.experimental.pallas import tpu as pltpu


# --------------------------------------------------------------------------- #
# Kernel 1: fused [prev BN+ReLU(+pool) on load] -> 3x3 pad=1 conv -> BN stats
# --------------------------------------------------------------------------- #
def _conv3x3_kernel(scale_ref, shift_ref, x_ref, w_ref,
                    o_ref, mean_ref, ssd_ref, xp_ref, col_ref, *, mode):
    """One image per grid step (grid axis is 'parallel').

    mode == "none"        : x_ref (Hi, Wi, Cin)        raw network input
    mode == "bn_relu"     : x_ref (Hi, Wi, Cin)        previous layer's RAW conv output
    mode == "bn_relu_pool": x_ref (Hi, 2, Wi, 2*Cin)   previous RAW conv output, 2x2 view

    scale_ref/shift_ref : (1, Cin)    previous layer's folded BN affine (unused for "none")
    w_ref   : (9*Cin, Cout)           conv taps flattened (ky, kx, cin)-major
    o_ref   : (Ho*Wo, Cout)           this layer's RAW conv output (pre-BN), flat spatial
    mean_ref, ssd_ref : (1, Cout)     per-image mean / sum of squared deviations
    xp_ref  : VMEM (Hi+2, Wi+2, Cin)  zero-padded activation (padding done in VMEM)
    col_ref : VMEM (Ho, Wo, 9*Cin)    im2col slab -> single MXU matmul operand
    """
    cin = xp_ref.shape[-1]
    hi, wi = xp_ref.shape[0] - 2, xp_ref.shape[1] - 2
    ho, wo = hi, wi                                    # 3x3 conv, padding=1

    # ---- previous layer's epilogue, fused into this layer's load path ----------
    if mode == "none":
        act = x_ref[...]
    elif mode == "bn_relu":
        act = jnp.maximum(x_ref[...] * scale_ref[...] + shift_ref[...], 0.0)
    else:  # "bn_relu_pool": maxpool2x2(relu(bn(x))) == max over quadrants of relu(bn(.))
        s, b = scale_ref[...], shift_ref[...]
        act = None
        for di in range(2):
            for dj in range(2):
                v = x_ref[:, di, :, dj * cin:(dj + 1) * cin]        # (Hi, Wi, Cin)
                z = jnp.maximum(v * s + b, 0.0)
                act = z if act is None else jnp.maximum(act, z)

    # ---- zero-pad (padding=1) entirely in VMEM ---------------------------------
    xp_ref[...] = jnp.zeros_like(xp_ref)
    xp_ref[1:hi + 1, 1:wi + 1, :] = act

    # ---- im2col: one strided block copy per tap (9 copies total) ---------------
    # Destination lane range is the tap's Cin-wide slot; source is a statically
    # offset (Ho, Wo, Cin) window of the padded activation.
    for ky in range(3):
        for kx in range(3):
            t = ky * 3 + kx
            col_ref[:, :, t * cin:(t + 1) * cin] = xp_ref[ky:ky + ho, kx:kx + wo, :]

    # ---- one MXU matmul per image: (Ho*Wo, 9*Cin) @ (9*Cin, Cout) ---------------
    # Reshape merges leading dims only (Wo is a multiple of 8 -> layout no-op).
    col = col_ref[...].reshape(ho * wo, 9 * cin)
    y = jnp.dot(col, w_ref[...], preferred_element_type=jnp.float32)

    # ---- per-image BN statistics (combined across images in the JAX glue) ------
    m = jnp.sum(y, axis=0, keepdims=True) * (1.0 / (ho * wo))       # (1, Cout)
    d = y - m
    mean_ref[...] = m
    ssd_ref[...] = jnp.sum(d * d, axis=0, keepdims=True)

    # ---- raw conv output (flat spatial), one full-block store ------------------
    o_ref[...] = y


# --------------------------------------------------------------------------- #
# Kernel 2: standalone epilogues (final layer / summary outputs)
# --------------------------------------------------------------------------- #
def _bn_relu_kernel(y_ref, scale_ref, shift_ref, o_ref):
    o_ref[...] = jnp.maximum(y_ref[...] * scale_ref[...] + shift_ref[...], 0.0)


def _bn_relu_pool_kernel(y_ref, scale_ref, shift_ref, o_ref):
    # y_ref: (H2, 2, W2, 2*C) -- 2x2 window quadrants on axis 1 / lane halves.
    c = o_ref.shape[-1]
    s, b = scale_ref[...], shift_ref[...]
    out = None
    for di in range(2):
        for dj in range(2):
            z = jnp.maximum(y_ref[:, di, :, dj * c:(dj + 1) * c] * s + b, 0.0)
            out = z if out is None else jnp.maximum(out, z)
    o_ref[...] = out


# --------------------------------------------------------------------------- #
# Wrappers
# --------------------------------------------------------------------------- #
def _conv_layer(x, w, scale, shift, *, mode):
    """Fused conv layer.  Returns (raw conv (N,Ho,Wo,Cout), per-image mean, per-image ssd)."""
    n = x.shape[0]
    if mode == "bn_relu_pool":
        hi, wi, cin = x.shape[1], x.shape[3], x.shape[4] // 2
        x_spec = pl.BlockSpec((None, hi, 2, wi, 2 * cin), lambda b: (b, 0, 0, 0, 0))
    else:
        hi, wi, cin = x.shape[1], x.shape[2], x.shape[3]
        x_spec = pl.BlockSpec((None, hi, wi, cin), lambda b: (b, 0, 0, 0))
    cout = w.shape[1]
    ho, wo = hi, wi                                    # 3x3 conv, padding=1

    conv_flat, mean_b, ssd_b = pl.pallas_call(
        functools.partial(_conv3x3_kernel, mode=mode),
        grid=(n,),
        in_specs=[
            pl.BlockSpec((1, cin), lambda b: (0, 0)),             # prev BN scale
            pl.BlockSpec((1, cin), lambda b: (0, 0)),             # prev BN shift
            x_spec,                                               # activation block
            pl.BlockSpec((9 * cin, cout), lambda b: (0, 0)),      # im2col weights
        ],
        out_specs=(
            pl.BlockSpec((None, ho * wo, cout), lambda b: (b, 0, 0)),
            pl.BlockSpec((None, 1, cout), lambda b: (b, 0, 0)),
            pl.BlockSpec((None, 1, cout), lambda b: (b, 0, 0)),
        ),
        out_shape=(
            jax.ShapeDtypeStruct((n, ho * wo, cout), jnp.float32),
            jax.ShapeDtypeStruct((n, 1, cout), jnp.float32),
            jax.ShapeDtypeStruct((n, 1, cout), jnp.float32),
        ),
        scratch_shapes=[
            pltpu.VMEM((hi + 2, wi + 2, cin), jnp.float32),       # zero-padded input
            pltpu.VMEM((ho, wo, 9 * cin), jnp.float32),           # im2col slab
        ],
        compiler_params=pltpu.CompilerParams(dimension_semantics=("parallel",)),
    )(scale, shift, x, w)
    # Row-major split of the flat spatial dim: metadata-only reshape, no HBM copy.
    return conv_flat.reshape(n, ho, wo, cout), mean_b, ssd_b


def _bn_affine(mean_b, ssd_b, gamma, beta, count_per_image, eps=1e-5):
    """Combine per-image partial stats (Chan et al., numerically stable) -> BN scale/shift."""
    n = mean_b.shape[0]
    mean = jnp.mean(mean_b, axis=0)                                       # (1, C)
    var = (jnp.sum(ssd_b, axis=0)
           + count_per_image * jnp.sum((mean_b - mean) ** 2, axis=0)) / (n * count_per_image)
    scale = gamma.reshape(1, -1) * jax.lax.rsqrt(var + eps)
    shift = beta.reshape(1, -1) - mean * scale
    return scale, shift


def _pool_view(y):
    # (N,H,W,C) -> (N,H//2,2,W//2,2*C): pure row-major split/merge => bitcast, no HBM copy.
    n, hh, ww, c = y.shape
    h2, w2 = hh // 2, ww // 2
    if hh % 2 or ww % 2:                       # MaxPool2d(2) floors odd spatial dims
        y = y[:, :2 * h2, :2 * w2, :]
    return y.reshape(n, h2, 2, w2, 2 * c)


def _bn_relu(y, scale, shift):
    n, hh, ww, c = y.shape
    return pl.pallas_call(
        _bn_relu_kernel,
        grid=(n,),
        in_specs=[pl.BlockSpec((None, hh, ww, c), lambda b: (b, 0, 0, 0)),
                  pl.BlockSpec((1, c), lambda b: (0, 0)),
                  pl.BlockSpec((1, c), lambda b: (0, 0))],
        out_specs=pl.BlockSpec((None, hh, ww, c), lambda b: (b, 0, 0, 0)),
        out_shape=jax.ShapeDtypeStruct((n, hh, ww, c), jnp.float32),
        compiler_params=pltpu.CompilerParams(dimension_semantics=("parallel",)),
    )(y, scale, shift)


def _bn_relu_pool(y, scale, shift):
    yv = _pool_view(y)
    n, h2, _, w2, c2 = yv.shape
    c = c2 // 2
    return pl.pallas_call(
        _bn_relu_pool_kernel,
        grid=(n,),
        in_specs=[pl.BlockSpec((None, h2, 2, w2, c2), lambda b: (b, 0, 0, 0, 0)),
                  pl.BlockSpec((1, c), lambda b: (0, 0)),
                  pl.BlockSpec((1, c), lambda b: (0, 0))],
        out_specs=pl.BlockSpec((None, h2, w2, c), lambda b: (b, 0, 0, 0)),
        out_shape=jax.ShapeDtypeStruct((n, h2, w2, c), jnp.float32),
        compiler_params=pltpu.CompilerParams(dimension_semantics=("parallel",)),
    )(yv, scale, shift)


# --------------------------------------------------------------------------- #
# Full model forward (PyTorch-facing NCHW in / NCHW out)
# --------------------------------------------------------------------------- #
def cnn_encoder1_forward(x_nchw, params, is_summary=False):
    x = jnp.transpose(x_nchw, (0, 2, 3, 1)).astype(jnp.float32)          # NHWC
    n, h, w, cin0 = x.shape
    dummy = jnp.zeros((1, cin0), jnp.float32)
    p1, p2, p3, p4 = params["l1"], params["l2"], params["l3"], params["l4"]

    # layer 1: conv on raw input
    c1, m1, s1 = _conv_layer(x, p1["w"], dummy, dummy, mode="none")
    sc1, sh1 = _bn_affine(m1, s1, p1["gamma"], p1["beta"], h * w)

    # layer 2: conv with BN1+ReLU1 fused into its load path
    c2, m2, s2 = _conv_layer(c1, p2["w"], sc1, sh1, mode="bn_relu")
    sc2, sh2 = _bn_affine(m2, s2, p2["gamma"], p2["beta"], h * w)

    # layer 3: conv with BN2+ReLU2 fused into its load path
    c3, m3, s3 = _conv_layer(c2, p3["w"], sc2, sh2, mode="bn_relu")
    sc3, sh3 = _bn_affine(m3, s3, p3["gamma"], p3["beta"], h * w)

    # layer 4: conv with BN3+ReLU3+MaxPool3 fused into its load path
    h3, w3 = h // 2, w // 2
    c4, m4, s4 = _conv_layer(_pool_view(c3), p4["w"], sc3, sh3, mode="bn_relu_pool")
    sc4, sh4 = _bn_affine(m4, s4, p4["gamma"], p4["beta"], h3 * w3)

    # final epilogue: BN4 + ReLU4 + MaxPool4
    out4 = _bn_relu_pool(c4, sc4, sh4)                                    # (N, H//4, W//4, 64)

    nchw = lambda t: jnp.transpose(t, (0, 3, 1, 2))
    summary = None
    if is_summary:
        summary = {"x": x_nchw,
                   "out1": nchw(_bn_relu(c1, sc1, sh1)),
                   "out2": nchw(_bn_relu(c2, sc2, sh2)),
                   "out3": nchw(_bn_relu_pool(c3, sc3, sh3)),
                   "out4": nchw(out4)}
    return nchw(out4), summary


# --------------------------------------------------------------------------- #
# Deterministic synthetic parameters
# --------------------------------------------------------------------------- #
def init_params(key):
    def layer(k, cin, cout):
        k1, k2, k3 = jax.random.split(k, 3)
        w = jax.random.normal(k1, (3, 3, cin, cout), jnp.float32) * (9 * cin) ** -0.5
        return {
            "w": w.reshape(9 * cin, cout),      # (ky, kx, cin)-major -> matches im2col
            "gamma": 1.0 + 0.1 * jax.random.normal(k2, (cout,), jnp.float32),
            "beta": 0.1 * jax.random.normal(k3, (cout,), jnp.float32),
            # Conv bias omitted: cancels exactly under train-mode BatchNorm.
        }
    ks = jax.random.split(key, 4)
    return {"l1": layer(ks[0], 3, 64), "l2": layer(ks[1], 64, 64),
            "l3": layer(ks[2], 64, 64), "l4": layer(ks[3], 64, 64)}


# --------------------------------------------------------------------------- #
# Pure-XLA reference of the same forward (for a correctness cross-check)
# --------------------------------------------------------------------------- #
def _reference_forward(x_nchw, params, eps=1e-5):
    x = jnp.transpose(x_nchw, (0, 2, 3, 1)).astype(jnp.float32)
    def layer(hcur, p, cin, pool):
        wt = p["w"].reshape(3, 3, cin, -1)
        y = jax.lax.conv_general_dilated(
            hcur, wt, window_strides=(1, 1), padding=((1, 1), (1, 1)),
            dimension_numbers=("NHWC", "HWIO", "NHWC"))
        mu = jnp.mean(y, axis=(0, 1, 2))
        var = jnp.mean((y - mu) ** 2, axis=(0, 1, 2))
        y = (y - mu) * jax.lax.rsqrt(var + eps) * p["gamma"] + p["beta"]
        y = jnp.maximum(y, 0.0)
        if pool:
            y = jax.lax.reduce_window(y, -jnp.inf, jax.lax.max,
                                      (1, 2, 2, 1), (1, 2, 2, 1), "VALID")
        return y
    y = layer(x, params["l1"], 3, False)
    y = layer(y, params["l2"], 64, False)
    y = layer(y, params["l3"], 64, True)
    y = layer(y, params["l4"], 64, True)
    return jnp.transpose(y, (0, 3, 1, 2))


if __name__ == "__main__":
    key = jax.random.PRNGKey(0)
    pkey, xkey = jax.random.split(key)
    params = init_params(pkey)

    # Small input consistent with the 3-channel conv stem (NCHW), spatial 16x16.
    x = jax.random.normal(xkey, (2, 3, 16, 16), jnp.float32)

    out4, _ = cnn_encoder1_forward(x, params, is_summary=False)
    out4 = jax.block_until_ready(out4)

    # 16 -> conv(16) -> conv(16) -> conv+pool(8) -> conv+pool(4); 64 channels.
    assert out4.shape == (2, 64, 4, 4), out4.shape
    assert bool(jnp.all(jnp.isfinite(out4)))

    # Cross-check against the pure-XLA reference of the same forward.
    ref = _reference_forward(x, params)
    err = float(jnp.max(jnp.abs(out4 - ref) / jnp.maximum(jnp.abs(ref), 1.0)))
    assert err < 2e-3, f"mismatch vs reference: max rel err {err}"

    print("KERNEL_OK")
</pallas_src>

<mosaic_0001>
module attributes {stable_mosaic.version = 11 : i64} {
  func.func @_conv3x3_kernel(%arg0: i32, %arg1: memref<1x3xf32, #tpu.memory_space<vmem>>, %arg2: memref<1x3xf32, #tpu.memory_space<vmem>>, %arg3: memref<1x16x16x3xf32, #tpu.memory_space<vmem>>, %arg4: memref<27x64xf32, #tpu.memory_space<vmem>>, %arg5: memref<1x256x64xf32, #tpu.memory_space<vmem>>, %arg6: memref<1x1x64xf32, #tpu.memory_space<vmem>>, %arg7: memref<1x1x64xf32, #tpu.memory_space<vmem>>, %arg8: memref<18x18x3xf32, #tpu.memory_space<vmem>>, %arg9: memref<16x16x27xf32, #tpu.memory_space<vmem>>) attributes {dimension_semantics = [#tpu.dimension_semantics<parallel>], iteration_bounds = array<i64: 2>, scalar_prefetch = 0 : i64, scratch_operands = 2 : i64, tpu.core_type = #tpu.core_type<tc>, window_params = [{pipeline_mode = #tpu.pipeline_mode<synchronous>, transform_indices = @transform_0, window_bounds = array<i64: 1, 3>}, {pipeline_mode = #tpu.pipeline_mode<synchronous>, transform_indices = @transform_1, window_bounds = array<i64: 1, 3>}, {transform_indices = @transform_2, window_bounds = array<i64: 1, 16, 16, 3>}, {pipeline_mode = #tpu.pipeline_mode<synchronous>, transform_indices = @transform_3, window_bounds = array<i64: 27, 64>}, {transform_indices = @transform_4, window_bounds = array<i64: 1, 256, 64>}, {transform_indices = @transform_5, window_bounds = array<i64: 1, 1, 64>}, {transform_indices = @transform_6, window_bounds = array<i64: 1, 1, 64>}]} {
    %c0 = arith.constant 0 : index
    %c0_0 = arith.constant 0 : index
    %c0_1 = arith.constant 0 : index
    %c0_2 = arith.constant 0 : index
    %0 = vector.load %arg3[%c0, %c0_0, %c0_1, %c0_2] : memref<1x16x16x3xf32, #tpu.memory_space<vmem>>, vector<1x16x16x3xf32>
    %1 = vector.shape_cast %0 : vector<1x16x16x3xf32> to vector<16x16x3xf32>
    %cst = arith.constant 0.000000e+00 : f32
    %2 = vector.broadcast %cst : f32 to vector<18x18x3xf32>
    %c0_3 = arith.constant 0 : index
    %c0_4 = arith.constant 0 : index
    %c0_5 = arith.constant 0 : index
    %3 = vector.load %arg8[%c0_3, %c0_4, %c0_5] : memref<18x18x3xf32, #tpu.memory_space<vmem>>, vector<18x18x3xf32>
    tpu.vector_store %arg8[%c0_3, %c0_4, %c0_5], %2 {strides = array<i32>} : memref<18x18x3xf32, #tpu.memory_space<vmem>>, vector<18x18x3xf32>,
    %c1 = arith.constant 1 : index
    %c1_6 = arith.constant 1 : index
    %c0_7 = arith.constant 0 : index
    %4 = vector.load %arg8[%c1, %c1_6, %c0_7] : memref<18x18x3xf32, #tpu.memory_space<vmem>>, vector<16x16x3xf32>
    tpu.vector_store %arg8[%c1, %c1_6, %c0_7], %1 {strides = array<i32>} : memref<18x18x3xf32, #tpu.memory_space<vmem>>, vector<16x16x3xf32>,
    %c0_8 = arith.constant 0 : index
    %c0_9 = arith.constant 0 : index
    %c0_10 = arith.constant 0 : index
    %5 = vector.load %arg8[%c0_8, %c0_9, %c0_10] : memref<18x18x3xf32, #tpu.memory_space<vmem>>, vector<16x16x3xf32>
    %c0_11 = arith.constant 0 : index
    %c0_12 = arith.constant 0 : index
    %c0_13 = arith.constant 0 : index
    %6 = vector.load %arg9[%c0_11, %c0_12, %c0_13] : memref<16x16x27xf32, #tpu.memory_space<vmem>>, vector<16x16x3xf32>
    tpu.vector_store %arg9[%c0_11, %c0_12, %c0_13], %5 {strides = array<i32>} : memref<16x16x27xf32, #tpu.memory_space<vmem>>, vector<16x16x3xf32>,
    %c0_14 = arith.constant 0 : index
    %c1_15 = arith.constant 1 : index
    %c0_16 = arith.constant 0 : index
    %7 = vector.load %arg8[%c0_14, %c1_15, %c0_16] : memref<18x18x3xf32, #tpu.memory_space<vmem>>, vector<16x16x3xf32>
    %c0_17 = arith.constant 0 : index
    %c0_18 = arith.constant 0 : index
    %c3 = arith.constant 3 : index
    %8 = vector.load %arg9[%c0_17, %c0_18, %c3] : memref<16x16x27xf32, #tpu.memory_space<vmem>>, vector<16x16x3xf32>
    tpu.vector_store %arg9[%c0_17, %c0_18, %c3], %7 {strides = array<i32>} : memref<16x16x27xf32, #tpu.memory_space<vmem>>, vector<16x16x3xf32>,
    %c0_19 = arith.constant 0 : index
    %c2 = arith.constant 2 : index
    %c0_20 = arith.constant 0 : index
    %9 = vector.load %arg8[%c0_19, %c2, %c0_20] : memref<18x18x3xf32, #tpu.memory_space<vmem>>, vector<16x16x3xf32>
    %c0_21 = arith.constant 0 : index
    %c0_22 = arith.constant 0 : index
    %c6 = arith.constant 6 : index
    %10 = vector.load %arg9[%c0_21, %c0_22, %c6] : memref<16x16x27xf32, #tpu.memory_space<vmem>>, vector<16x16x3xf32>
    tpu.vector_store %arg9[%c0_21, %c0_22, %c6], %9 {strides = array<i32>} : memref<16x16x27xf32, #tpu.memory_space<vmem>>, vector<16x16x3xf32>,
    %c1_23 = arith.constant 1 : index
    %c0_24 = arith.constant 0 : index
    %c0_25 = arith.constant 0 : index
    %11 = vector.load %arg8[%c1_23, %c0_24, %c0_25] : memref<18x18x3xf32, #tpu.memory_space<vmem>>, vector<16x16x3xf32>
    %c0_26 = arith.constant 0 : index
    %c0_27 = arith.constant 0 : index
    %c9 = arith.constant 9 : index
    %12 = vector.load %arg9[%c0_26, %c0_27, %c9] : memref<16x16x27xf32, #tpu.memory_space<vmem>>, vector<16x16x3xf32>
    tpu.vector_store %arg9[%c0_26, %c0_27, %c9], %11 {strides = array<i32>} : memref<16x16x27xf32, #tpu.memory_space<vmem>>, vector<16x16x3xf32>,
    %c1_28 = arith.constant 1 : index
    %c1_29 = arith.constant 1 : index
    %c0_30 = arith.constant 0 : index
    %13 = vector.load %arg8[%c1_28, %c1_29, %c0_30] : memref<18x18x3xf32, #tpu.memory_space<vmem>>, vector<16x16x3xf32>
    %c0_31 = arith.constant 0 : index
    %c0_32 = arith.constant 0 : index
    %c12 = arith.constant 12 : index
    %14 = vector.load %arg9[%c0_31, %c0_32, %c12] : memref<16x16x27xf32, #tpu.memory_space<vmem>>, vector<16x16x3xf32>
    tpu.vector_store %arg9[%c0_31, %c0_32, %c12], %13 {strides = array<i32>} : memref<16x16x27xf32, #tpu.memory_space<vmem>>, vector<16x16x3xf32>,
    %c1_33 = arith.constant 1 : index
    %c2_34 = arith.constant 2 : index
    %c0_35 = arith.constant 0 : index
    %15 = vector.load %arg8[%c1_33, %c2_34, %c0_35] : memref<18x18x3xf32, #tpu.memory_space<vmem>>, vector<16x16x3xf32>
    %c0_36 = arith.constant 0 : index
    %c0_37 = arith.constant 0 : index
    %c15 = arith.constant 15 : index
    %16 = vector.load %arg9[%c0_36, %c0_37, %c15] : memref<16x16x27xf32, #tpu.memory_space<vmem>>, vector<16x16x3xf32>
    tpu.vector_store %arg9[%c0_36, %c0_37, %c15], %15 {strides = array<i32>} : memref<16x16x27xf32, #tpu.memory_space<vmem>>, vector<16x16x3xf32>,
    %c2_38 = arith.constant 2 : index
    %c0_39 = arith.constant 0 : index
    %c0_40 = arith.constant 0 : index
    %17 = vector.load %arg8[%c2_38, %c0_39, %c0_40] : memref<18x18x3xf32, #tpu.memory_space<vmem>>, vector<16x16x3xf32>
    %c0_41 = arith.constant 0 : index
    %c0_42 = arith.constant 0 : index
    %c18 = arith.constant 18 : index
    %18 = vector.load %arg9[%c0_41, %c0_42, %c18] : memref<16x16x27xf32, #tpu.memory_space<vmem>>, vector<16x16x3xf32>
    tpu.vector_store %arg9[%c0_41, %c0_42, %c18], %17 {strides = array<i32>} : memref<16x16x27xf32, #tpu.memory_space<vmem>>, vector<16x16x3xf32>,
    %c2_43 = arith.constant 2 : index
    %c1_44 = arith.constant 1 : index
    %c0_45 = arith.constant 0 : index
    %19 = vector.load %arg8[%c2_43, %c1_44, %c0_45] : memref<18x18x3xf32, #tpu.memory_space<vmem>>, vector<16x16x3xf32>
    %c0_46 = arith.constant 0 : index
    %c0_47 = arith.constant 0 : index
    %c21 = arith.constant 21 : index
    %20 = vector.load %arg9[%c0_46, %c0_47, %c21] : memref<16x16x27xf32, #tpu.memory_space<vmem>>, vector<16x16x3xf32>
    tpu.vector_store %arg9[%c0_46, %c0_47, %c21], %19 {strides = array<i32>} : memref<16x16x27xf32, #tpu.memory_space<vmem>>, vector<16x16x3xf32>,
    %c2_48 = arith.constant 2 : index
    %c2_49 = arith.constant 2 : index
    %c0_50 = arith.constant 0 : index
    %21 = vector.load %arg8[%c2_48, %c2_49, %c0_50] : memref<18x18x3xf32, #tpu.memory_space<vmem>>, vector<16x16x3xf32>
    %c0_51 = arith.constant 0 : index
    %c0_52 = arith.constant 0 : index
    %c24 = arith.constant 24 : index
    %22 = vector.load %arg9[%c0_51, %c0_52, %c24] : memref<16x16x27xf32, #tpu.memory_space<vmem>>, vector<16x16x3xf32>
    tpu.vector_store %arg9[%c0_51, %c0_52, %c24], %21 {strides = array<i32>} : memref<16x16x27xf32, #tpu.memory_space<vmem>>, vector<16x16x3xf32>,
    %c0_53 = arith.constant 0 : index
    %c0_54 = arith.constant 0 : index
    %c0_55 = arith.constant 0 : index
    %23 = vector.load %arg9[%c0_53, %c0_54, %c0_55] : memref<16x16x27xf32, #tpu.memory_space<vmem>>, vector<16x16x27xf32>
    %24 = vector.shape_cast %23 : vector<16x16x27xf32> to vector<256x27xf32>
    %c0_56 = arith.constant 0 : index
    %c0_57 = arith.constant 0 : index
    %25 = vector.load %arg4[%c0_56, %c0_57] : memref<27x64xf32, #tpu.memory_space<vmem>>, vector<27x64xf32>
    %cst_58 = arith.constant dense<0.000000e+00> : vector<256x64xf32>
    %26 = tpu.matmul %24, %25, %cst_58 {dimension_numbers = #tpu.dot_dimension_numbers<[1], [0], [0], [1], [0, 0, 1, 1], [], []>} : vector<256x27xf32>, vector<27x64xf32>, vector<256x64xf32> -> vector<256x64xf32>
    %cst_59 = arith.constant dense<0.000000e+00> : vector<64xf32>
    %27 = vector.multi_reduction <add>, %26, %cst_59 [0] : vector<256x64xf32> to vector<64xf32>
    %28 = vector.shape_cast %27 : vector<64xf32> to vector<1x64xf32>
    %cst_60 = arith.constant 3.906250e-03 : f32
    %29 = vector.broadcast %cst_60 : f32 to vector<1x64xf32>
    %30 = arith.mulf %28, %29 : vector<1x64xf32>
    %31 = vector.broadcast %30 : vector<1x64xf32> to vector<256x64xf32>
    %32 = arith.subf %26, %31 : vector<256x64xf32>
    %c0_61 = arith.constant 0 : index
    %c0_62 = arith.constant 0 : index
    %c0_63 = arith.constant 0 : index
    %33 = vector.load %arg6[%c0_61, %c0_62, %c0_63] : memref<1x1x64xf32, #tpu.memory_space<vmem>>, vector<1x1x64xf32>
    %34 = vector.shape_cast %33 : vector<1x1x64xf32> to vector<1x64xf32>
    %35 = vector.shape_cast %30 : vector<1x64xf32> to vector<1x1x64xf32>
    tpu.vector_store %arg6[%c0_61, %c0_62, %c0_63], %35 {strides = array<i32>} : memref<1x1x64xf32, #tpu.memory_space<vmem>>, vector<1x1x64xf32>,
    %36 = arith.mulf %32, %32 : vector<256x64xf32>
    %cst_64 = arith.constant dense<0.000000e+00> : vector<64xf32>
    %37 = vector.multi_reduction <add>, %36, %cst_64 [0] : vector<256x64xf32> to vector<64xf32>
    %38 = vector.shape_cast %37 : vector<64xf32> to vector<1x64xf32>
    %c0_65 = arith.constant 0 : index
    %c0_66 = arith.constant 0 : index
    %c0_67 = arith.constant 0 : index
    %39 = vector.load %arg7[%c0_65, %c0_66, %c0_67] : memref<1x1x64xf32, #tpu.memory_space<vmem>>, vector<1x1x64xf32>
    %40 = vector.shape_cast %39 : vector<1x1x64xf32> to vector<1x64xf32>
    %41 = vector.shape_cast %38 : vector<1x64xf32> to vector<1x1x64xf32>
    tpu.vector_store %arg7[%c0_65, %c0_66, %c0_67], %41 {strides = array<i32>} : memref<1x1x64xf32, #tpu.memory_space<vmem>>, vector<1x1x64xf32>,
    %c0_68 = arith.constant 0 : index
    %c0_69 = arith.constant 0 : index
    %c0_70 = arith.constant 0 : index
    %42 = vector.load %arg5[%c0_68, %c0_69, %c0_70] : memref<1x256x64xf32, #tpu.memory_space<vmem>>, vector<1x256x64xf32>
    %43 = vector.shape_cast %42 : vector<1x256x64xf32> to vector<256x64xf32>
    %44 = vector.shape_cast %26 : vector<256x64xf32> to vector<1x256x64xf32>
    tpu.vector_store %arg5[%c0_68, %c0_69, %c0_70], %44 {strides = array<i32>} : memref<1x256x64xf32, #tpu.memory_space<vmem>>, vector<1x256x64xf32>,
    return
  }
  func.func @transform_0(%arg0: i32) -> (i32, i32) {
    %c0_i32 = arith.constant 0 : i32
    %c0_i32_0 = arith.constant 0 : i32
    %c0_i32_1 = arith.constant 0 : i32
    return %c0_i32, %c0_i32_0 : i32, i32
  }
  func.func @transform_1(%arg0: i32) -> (i32, i32) {
    %c0_i32 = arith.constant 0 : i32
    %c0_i32_0 = arith.constant 0 : i32
    %c0_i32_1 = arith.constant 0 : i32
    return %c0_i32, %c0_i32_0 : i32, i32
  }
  func.func @transform_2(%arg0: i32) -> (i32, i32, i32, i32) {
    %c0_i32 = arith.constant 0 : i32
    %c0_i32_0 = arith.constant 0 : i32
    %c0_i32_1 = arith.constant 0 : i32
    %c0_i32_2 = arith.constant 0 : i32
    return %arg0, %c0_i32, %c0_i32_0, %c0_i32_1 : i32, i32, i32, i32
  }
  func.func @transform_3(%arg0: i32) -> (i32, i32) {
    %c0_i32 = arith.constant 0 : i32
    %c0_i32_0 = arith.constant 0 : i32
    %c0_i32_1 = arith.constant 0 : i32
    return %c0_i32, %c0_i32_0 : i32, i32
  }
  func.func @transform_4(%arg0: i32) -> (i32, i32, i32) {
    %c0_i32 = arith.constant 0 : i32
    %c0_i32_0 = arith.constant 0 : i32
    %c0_i32_1 = arith.constant 0 : i32
    return %arg0, %c0_i32, %c0_i32_0 : i32, i32, i32
  }
  func.func @transform_5(%arg0: i32) -> (i32, i32, i32) {
    %c0_i32 = arith.constant 0 : i32
    %c0_i32_0 = arith.constant 0 : i32
    %c0_i32_1 = arith.constant 0 : i32
    return %arg0, %c0_i32, %c0_i32_0 : i32, i32, i32
  }
  func.func @transform_6(%arg0: i32) -> (i32, i32, i32) {
    %c0_i32 = arith.constant 0 : i32
    %c0_i32_0 = arith.constant 0 : i32
    %c0_i32_1 = arith.constant 0 : i32
    return %arg0, %c0_i32, %c0_i32_0 : i32, i32, i32
  }
}

</mosaic_0001>

<bundles_post_ra>
// kernel: tpu_custom_call.1
= control target key start
LH: loop header
LB: loop body
LE: loop exit
PB: predicated region body
PF: predicated region fallthrough
CT: control target
= control target key end

     0   :  { %12 = vsyncpa [#allocation5], 0  ;;  %s4471_s0 = inlined_call_operand.vmem [shape: f32[1,3], index: 0, kind: input, shape index: {}]   ;;  %s4472_s1 = inlined_call_operand.vmem [shape: f32[1,3], index: 1, kind: input, shape index: {}]   ;;  %s4473_s2 = inlined_call_operand.vmem [shape: f32[2,16,16,3], index: 2, kind: input, shape index: {}]   ;;  %s4474_s3 = inlined_call_operand.vmem [shape: f32[27,64], index: 3, kind: input, shape index: {}]   ;;  %s4475_s4 = inlined_call_operand.vmem [shape: f32[2,256,64], index: 4, kind: output, shape index: {0}]   ;;  %s4476_s5 = inlined_call_operand.hbm [shape: f32[2,1,64], index: 5, kind: output, shape index: {1}]   ;;  %s4477_s6 = inlined_call_operand.hbm [shape: f32[2,1,64], index: 6, kind: output, shape index: {2}]  }
   0x1   :  { %14 = vsyncpa [#allocation5 + $0x1], 0 }
   0x2   :  { %15 = vsyncpa [#allocation7], 0 }
   0x3   :  { %17 = vsyncpa [#allocation7 + $0x1], 0  ;;  %s3086_s0 = smov 0   ;;  %s3088_s1 = smov 0  }
   0x4   :  { %s3090_s21 = smov 0   ;;  %s3092_s22 = smov 0  }
   0x5 LB: > { %s3107_s23 = sadd.s32 4294967295, %s3038_s22   ;;  %s2748_s24 = sadd.s32 4294967294, %s3038_s22   ;;  %s3038_s22 = sphi %s3092_s22, %s4483_s22   ;;  %s3034_s21 = sphi %s3090_s21, %s4482_s21   ;;  %s3030_s1 = sphi %s3088_s1, %s4481_s1   ;;  %s3026_s0 = sphi %s3086_s0, %s4480_s0  }
   0x6   : > { %s3111_s25 = sadd.s32 1, %s3038_s22   ;;  %s145_s26 = sadd.s32 1, %s3034_s21 }
   0x7   : > { %s142_s27 = ssub.s32 %s3038_s22, %s3111_s25  ;;  %p155_p0 = scmp.ne.s32.totalorder %s3034_s21, %s3030_s1 }
   0x8   : > { %p143_p1 = scmp.eq.s32.totalorder %s142_s27, 0  ;;  %p156_p2 = scmp.eq.s32.totalorder %s3107_s23, 1 }
   0x9   : > { %p161_p3 = scmp.ne.s32.totalorder %s3030_s1, %s3026_s0  ;;  %p162_p4 = scmp.eq.s32.totalorder %s2748_s24, 1 }
   0xa   : > { %s3122_s28 = scalar_select %p143_p1, %s3034_s21, %s145_s26  }
   0xb   : > { %p3124_p5 = por %p156_p2, %p155_p0  ;;  %p3128_p6 = por %p162_p4, %p161_p3 }
   0xc   : > { %p2751_p7 = scmp.ge.s32.totalorder %s3038_s22, 1  ;;  %p223_p8 = scmp.lt.s32.totalorder %s3038_s22, 3 }
   0xe   : > { %p224_p9 = pnand %p2751_p7, %p223_p8 }
   0xf   : > { %p261_p10 = scmp.lt.s32.totalorder (!%p224_p9), %s3107_s23, 1  ;;  %s3041_s12 = smov (!%p224_p9), 3  }
  0x10   : > { %227 = sbr.rel (%p224_p9) target bundleno = 1007 (0x3ef), region = 36  ;;  %s3042_s13 = smov (!%p224_p9), 6  }
  0x11   : > { %s3043_s14 = smov (!%p224_p9), 9   ;;  %s3044_s15 = smov (!%p224_p9), 12  }
  0x12   : > { %s3045_s16 = smov (!%p224_p9), 15   ;;  %s3046_s17 = smov (!%p224_p9), 18  }
  0x13   : > { %s3047_s18 = smov (!%p224_p9), 21   ;;  %s3048_s27 = smov (!%p224_p9), 24  }
  0x15   : > { %vm303_vm0 = vcmask 23552   ;;  %vm306_vm1 = vcmask 17408   ;;  %v3040_v0 = vmov 0.0   ;;  %s3192_s7 = scalar_select %p261_p10, %s3107_s23, 1  ;;  %vm2134_vm2 = vcmask 1042432  }
  0x16   : > { %304 = vst.msk [vmem:[#allocation2] sm:$0xff] %vm303_vm0, %v3040_v0  ;;  %305 = vst.msk [vmem:[#allocation2 + $0x8] sm:$0xff] %vm303_vm0, %v3040_v0  ;;  %vm616_vm3 = vcmask 48152   ;;  %vm809_vm4 = vcmask 72752   ;;  %vm1002_vm5 = vcmask 97352   ;;  %vm1195_vm6 = vcmask 121952  }
  0x17   : > { %308 = vst.msk [vmem:[#allocation2 + $0x18] sm:$0xff] %vm303_vm0, %v3040_v0  ;;  %309 = vst.msk [vmem:[#allocation2 + $0x20] sm:$0xff] %vm303_vm0, %v3040_v0  ;;  %s2793_s8 = sshll.u32 %s3192_s7, 8  ;;  %vm1388_vm7 = vcmask 146552   ;;  %vm1582_vm8 = vcmask 171152   ;;  %vm1775_vm9 = vcmask 195752  }
  0x18   : > { %311 = vst.msk [vmem:[#allocation2 + $0x30] sm:$0xff] %vm303_vm0, %v3040_v0  ;;  %312 = vst.msk [vmem:[#allocation2 + $0x38] sm:$0xff] %vm303_vm0, %v3040_v0  ;;  %s3200_s11 = scalar_lea.vmem %s4473_s2, %s2793_s8  ;;  %vm1968_vm10 = vcmask 220352   ;;  %vm2037_vm11 = vcmask 220160   ;;  %s3933_s24 = scalar_lea.vmem %s4475_s4, %s2793_s8  ;;  %vm2363_vm12 = vcmask 523264   ;;  %vm2466_vm13 = vcmask 516096  }
  0x19   : > { %314 = vst.msk [vmem:[#allocation2 + $0x48] sm:$0xff] %vm303_vm0, %v3040_v0  ;;  %315 = vst.msk [vmem:[#allocation2 + $0x50] sm:$0xff] %vm303_vm0, %v3040_v0  ;;  %v271_v1 = vld [vmem:[%s3200_s11] sm:$0xff]  ;;  %v273_v2 = vld [vmem:[%s3200_s11 + $0x10] sm:$0xff]  ;;  %s4299_s7 = sand.u32 1, %s3030_s1   ;;  %s2789_s8 = sshll.u32 %s3107_s23, 4 }
  0x1a   : > { %317 = vst.msk [vmem:[#allocation2 + $0x60] sm:$0xff] %vm303_vm0, %v3040_v0  ;;  %318 = vst.msk [vmem:[#allocation2 + $0x68] sm:$0xff] %vm303_vm0, %v3040_v0  ;;  %v272_v3 = vld [vmem:[%s3200_s11 + $0x8] sm:$0xff]  ;;  %v275_v4 = vld [vmem:[%s3200_s11 + $0x20] sm:$0xff] }
  0x1b   : > { %320 = vst.msk [vmem:[#allocation2 + $0x78] sm:$0xff] %vm303_vm0, %v3040_v0  ;;  %321 = vst.msk [vmem:[#allocation2 + $0x80] sm:$0xff] %vm303_vm0, %v3040_v0  ;;  %v274_v5 = vld [vmem:[%s3200_s11 + $0x18] sm:$0xff]  ;;  %v277_v6 = vld [vmem:[%s3200_s11 + $0x30] sm:$0xff] }
  0x1c   : > { %323 = vst.msk [vmem:[#allocation2 + $0x90] sm:$0xff] %vm303_vm0, %v3040_v0  ;;  %324 = vst.msk [vmem:[#allocation2 + $0x98] sm:$0xff] %vm303_vm0, %v3040_v0  ;;  %v276_v9 = vld [vmem:[%s3200_s11 + $0x28] sm:$0xff]  ;;  %v279_v10 = vld [vmem:[%s3200_s11 + $0x40] sm:$0xff] }
  0x1d   : > { %326 = vst.msk [vmem:[#allocation2 + $0xa8] sm:$0xff] %vm303_vm0, %v3040_v0  ;;  %327 = vst.msk [vmem:[#allocation2 + $0xb0] sm:$0xff] %vm303_vm0, %v3040_v0  ;;  %v456_v7 = vld [vmem:[#allocation2 + $0x1] sm:$0xff]  ;;  %v278_v11 = vld [vmem:[%s3200_s11 + $0x38] sm:$0xff] }
  0x1e   : > { %329 = vst.msk [vmem:[#allocation2 + $0xc0] sm:$0xff] %vm303_vm0, %v3040_v0  ;;  %330 = vst.msk [vmem:[#allocation2 + $0xc8] sm:$0xff] %vm303_vm0, %v3040_v0  ;;  %520 = vrot.lane.b32.xlu0 %v456_v7, %s3041_s12  ;;  %v281_v12 = vld [vmem:[%s3200_s11 + $0x50] sm:$0xff]  ;;  %v280_v13 = vld [vmem:[%s3200_s11 + $0x48] sm:$0xff] }
  0x1f   : > { %332 = vst.msk [vmem:[#allocation2 + $0xd8] sm:$0xff] %vm303_vm0, %v3040_v0  ;;  %333 = vst.msk [vmem:[#allocation2 + $0xe0] sm:$0xff] %vm303_vm0, %v3040_v0  ;;  %v283_v14 = vld [vmem:[%s3200_s11 + $0x60] sm:$0xff]  ;;  %v282_v15 = vld [vmem:[%s3200_s11 + $0x58] sm:$0xff] }
  0x20   : > { %335 = vst.msk [vmem:[#allocation2 + $0xf0] sm:$0xff] %vm303_vm0, %v3040_v0  ;;  %336 = vst.msk [vmem:[#allocation2 + $0xf8] sm:$0xff] %vm303_vm0, %v3040_v0  ;;  %v285_v16 = vld [vmem:[%s3200_s11 + $0x70] sm:$0xff]  ;;  %v284_v17 = vld [vmem:[%s3200_s11 + $0x68] sm:$0xff] }
  0x21   : > { %338 = vst.msk [vmem:[#allocation2 + $0x108] sm:$0xff] %vm303_vm0, %v3040_v0  ;;  %339 = vst.msk [vmem:[#allocation2 + $0x110] sm:$0xff] %vm303_vm0, %v3040_v0  ;;  %v287_v18 = vld [vmem:[%s3200_s11 + $0x80] sm:$0xff]  ;;  %v286_v19 = vld [vmem:[%s3200_s11 + $0x78] sm:$0xff] }
  0x22   : > { %341 = vst.msk [vmem:[#allocation2 + $0x120] sm:$0xff] %vm303_vm0, %v3040_v0  ;;  %342 = vst.msk [vmem:[#allocation2 + $0x128] sm:$0xff] %vm303_vm0, %v3040_v0  ;;  %v289_v20 = vld [vmem:[%s3200_s11 + $0x90] sm:$0xff]  ;;  %v288_v21 = vld [vmem:[%s3200_s11 + $0x88] sm:$0xff] }
  0x23   : > { %344 = vst.msk [vmem:[#allocation2 + $0x138] sm:$0xff] %vm303_vm0, %v3040_v0  ;;  %345 = vst.msk [vmem:[#allocation2 + $0x140] sm:$0xff] %vm303_vm0, %v3040_v0  ;;  %v291_v22 = vld [vmem:[%s3200_s11 + $0xa0] sm:$0xff]  ;;  %v290_v23 = vld [vmem:[%s3200_s11 + $0x98] sm:$0xff] }
  0x24   : > { %347 = vst.msk [vmem:[#allocation2 + $0x150] sm:$0xff] %vm303_vm0, %v3040_v0  ;;  %348 = vst.msk [vmem:[#allocation2 + $0x158] sm:$0xff] %vm303_vm0, %v3040_v0  ;;  %v293_v24 = vld [vmem:[%s3200_s11 + $0xb0] sm:$0xff]  ;;  %v292_v28 = vld [vmem:[%s3200_s11 + $0xa8] sm:$0xff] }
  0x25   : > { %350 = vst.msk [vmem:[#allocation2 + $0x168] sm:$0xff] %vm303_vm0, %v3040_v0  ;;  %351 = vst.msk [vmem:[#allocation2 + $0x170] sm:$0xff] %vm303_vm0, %v3040_v0  ;;  %v295_v29 = vld [vmem:[%s3200_s11 + $0xc0] sm:$0xff]  ;;  %v294_v33 = vld [vmem:[%s3200_s11 + $0xb8] sm:$0xff] }
  0x26   : > { %353 = vst.msk [vmem:[#allocation2 + $0x180] sm:$0xff] %vm303_vm0, %v3040_v0  ;;  %354 = vst.msk [vmem:[#allocation2 + $0x188] sm:$0xff] %vm303_vm0, %v3040_v0  ;;  %v297_v34 = vld [vmem:[%s3200_s11 + $0xd0] sm:$0xff]  ;;  %v296_v35 = vld [vmem:[%s3200_s11 + $0xc8] sm:$0xff] }
  0x27   : > { %356 = vst.msk [vmem:[#allocation2 + $0x198] sm:$0xff] %vm303_vm0, %v3040_v0  ;;  %357 = vst.msk [vmem:[#allocation2 + $0x1a0] sm:$0xff] %vm303_vm0, %v3040_v0  ;;  %v299_v36 = vld [vmem:[%s3200_s11 + $0xe0] sm:$0xff]  ;;  %v298_v37 = vld [vmem:[%s3200_s11 + $0xd8] sm:$0xff] }
  0x28   : > { %307 = vst.msk [vmem:[#allocation2 + $0x10] sm:$0x3] %vm306_vm1, %v3040_v0  ;;  %310 = vst.msk [vmem:[#allocation2 + $0x28] sm:$0x3] %vm306_vm1, %v3040_v0  ;;  %v300_v39 = vld [vmem:[%s3200_s11 + $0xe8] sm:$0xff]  ;;  %v392_v46 = vld [vmem:[#allocation2] sm:$0xff] }
  0x29   : > { %313 = vst.msk [vmem:[#allocation2 + $0x40] sm:$0x3] %vm306_vm1, %v3040_v0  ;;  %316 = vst.msk [vmem:[#allocation2 + $0x58] sm:$0x3] %vm306_vm1, %v3040_v0  ;;  %v393_v49 = vld [vmem:[#allocation2 + $0x8] sm:$0xff] }
  0x2a   : > { %319 = vst.msk [vmem:[#allocation2 + $0x70] sm:$0x3] %vm306_vm1, %v3040_v0  ;;  %322 = vst.msk [vmem:[#allocation2 + $0x88] sm:$0x3] %vm306_vm1, %v3040_v0 }
  0x2b   : > { %325 = vst.msk [vmem:[#allocation2 + $0xa0] sm:$0x3] %vm306_vm1, %v3040_v0  ;;  %328 = vst.msk [vmem:[#allocation2 + $0xb8] sm:$0x3] %vm306_vm1, %v3040_v0 }
  0x2c   : > { %331 = vst.msk [vmem:[#allocation2 + $0xd0] sm:$0x3] %vm306_vm1, %v3040_v0  ;;  %334 = vst.msk [vmem:[#allocation2 + $0xe8] sm:$0x3] %vm306_vm1, %v3040_v0 }
  0x2d   : > { %337 = vst.msk [vmem:[#allocation2 + $0x100] sm:$0x3] %vm306_vm1, %v3040_v0  ;;  %340 = vst.msk [vmem:[#allocation2 + $0x118] sm:$0x3] %vm306_vm1, %v3040_v0 }
  0x2e   : > { %343 = vst.msk [vmem:[#allocation2 + $0x130] sm:$0x3] %vm306_vm1, %v3040_v0  ;;  %346 = vst.msk [vmem:[#allocation2 + $0x148] sm:$0x3] %vm306_vm1, %v3040_v0 }
  0x2f   : > { %349 = vst.msk [vmem:[#allocation2 + $0x160] sm:$0x3] %vm306_vm1, %v3040_v0  ;;  %352 = vst.msk [vmem:[#allocation2 + $0x178] sm:$0x3] %vm306_vm1, %v3040_v0  ;;  %v457_v8 = vld [vmem:[#allocation2 + $0x9] sm:$0xff] }
  0x30   : > { %355 = vst.msk [vmem:[#allocation2 + $0x190] sm:$0x3] %vm306_vm1, %v3040_v0  ;;  %358 = vst.msk [vmem:[#allocation2 + $0x1a8] sm:$0x3] %vm306_vm1, %v3040_v0  ;;  %522 = vrot.lane.b32.xlu0 %v457_v8, %s3041_s12 }
  0x31   : > { %360 = vst.msk [vmem:[#allocation2 + $0x19] sm:$0xff] %vm303_vm0, %v271_v1  ;;  %362 = vst.msk [vmem:[#allocation2 + $0x31] sm:$0xff] %vm303_vm0, %v273_v2 }
  0x32   : > { %361 = vst.msk [vmem:[#allocation2 + $0x21] sm:$0xff] %vm303_vm0, %v272_v3  ;;  %364 = vst.msk [vmem:[#allocation2 + $0x49] sm:$0xff] %vm303_vm0, %v275_v4 }
  0x33   : > { %363 = vst.msk [vmem:[#allocation2 + $0x39] sm:$0xff] %vm303_vm0, %v274_v5  ;;  %366 = vst.msk [vmem:[#allocation2 + $0x61] sm:$0xff] %vm303_vm0, %v277_v6 }
  0x34   : > { %365 = vst.msk [vmem:[#allocation2 + $0x51] sm:$0xff] %vm303_vm0, %v276_v9  ;;  %368 = vst.msk [vmem:[#allocation2 + $0x79] sm:$0xff] %vm303_vm0, %v279_v10 }
  0x35   : > { %367 = vst.msk [vmem:[#allocation2 + $0x69] sm:$0xff] %vm303_vm0, %v278_v11  ;;  %370 = vst.msk [vmem:[#allocation2 + $0x91] sm:$0xff] %vm303_vm0, %v281_v12 }
  0x36   : > { %369 = vst.msk [vmem:[#allocation2 + $0x81] sm:$0xff] %vm303_vm0, %v280_v13  ;;  %372 = vst.msk [vmem:[#allocation2 + $0xa9] sm:$0xff] %vm303_vm0, %v283_v14 }
  0x37   : > { %371 = vst.msk [vmem:[#allocation2 + $0x99] sm:$0xff] %vm303_vm0, %v282_v15  ;;  %374 = vst.msk [vmem:[#allocation2 + $0xc1] sm:$0xff] %vm303_vm0, %v285_v16 }
  0x38   : > { %373 = vst.msk [vmem:[#allocation2 + $0xb1] sm:$0xff] %vm303_vm0, %v284_v17  ;;  %376 = vst.msk [vmem:[#allocation2 + $0xd9] sm:$0xff] %vm303_vm0, %v287_v18  ;;  %v3245_v25 = vld [vmem:[#allocation2 + $0x19] sm:$0xff]  ;;  %v3247_v26 = vld [vmem:[#allocation2 + $0x31] sm:$0xff] }
  0x39   : > { %375 = vst.msk [vmem:[#allocation2 + $0xc9] sm:$0xff] %vm303_vm0, %v286_v19  ;;  %378 = vst.msk [vmem:[#allocation2 + $0xf1] sm:$0xff] %vm303_vm0, %v289_v20  ;;  %524 = vrot.lane.b32.xlu1 %v3245_v25, %s3041_s12  ;;  %v3254_v27 = vld [vmem:[#allocation2 + $0x21] sm:$0xff]  ;;  %528 = vrot.lane.b32.xlu0 %v3247_v26, %s3041_s12  ;;  %v3262_v30 = vld [vmem:[#allocation2 + $0x49] sm:$0xff] }
  0x3a   : > { %377 = vst.msk [vmem:[#allocation2 + $0xe1] sm:$0xff] %vm303_vm0, %v288_v21  ;;  %380 = vst.msk [vmem:[#allocation2 + $0x109] sm:$0xff] %vm303_vm0, %v291_v22  ;;  %v3266_v31 = vld [vmem:[#allocation2 + $0x39] sm:$0xff]  ;;  %v3270_v32 = vld [vmem:[#allocation2 + $0x61] sm:$0xff] }
  0x3b   : > { %379 = vst.msk [vmem:[#allocation2 + $0xf9] sm:$0xff] %vm303_vm0, %v290_v23  ;;  %382 = vst.msk [vmem:[#allocation2 + $0x121] sm:$0xff] %vm303_vm0, %v293_v24  ;;  %v3282_v38 = vld [vmem:[#allocation2 + $0x51] sm:$0xff]  ;;  %v3290_v40 = vld [vmem:[#allocation2 + $0x79] sm:$0xff] }
  0x3c   : > { %381 = vst.msk [vmem:[#allocation2 + $0x111] sm:$0xff] %vm303_vm0, %v292_v28  ;;  %384 = vst.msk [vmem:[#allocation2 + $0x139] sm:$0xff] %vm303_vm0, %v295_v29  ;;  %v3294_v41 = vld [vmem:[#allocation2 + $0x69] sm:$0xff]  ;;  %v3296_v42 = vld [vmem:[#allocation2 + $0x20] sm:$0xff] }
  0x3d   : > { %526 = vrot.lane.b32.xlu1 %v3254_v27, %s3041_s12  ;;  %532 = vrot.lane.b32.xlu0 %v3262_v30, %s3041_s12  ;;  %383 = vst.msk [vmem:[#allocation2 + $0x129] sm:$0xff] %vm303_vm0, %v294_v33  ;;  %386 = vst.msk [vmem:[#allocation2 + $0x151] sm:$0xff] %vm303_vm0, %v297_v34  ;;  %v3298_v43 = vld [vmem:[#allocation2 + $0x18] sm:$0xff]  ;;  %v3302_v44 = vld [vmem:[#allocation2 + $0x30] sm:$0xff] }
  0x3e   : > { %385 = vst.msk [vmem:[#allocation2 + $0x141] sm:$0xff] %vm303_vm0, %v296_v35  ;;  %388 = vst.msk [vmem:[#allocation2 + $0x169] sm:$0xff] %vm303_vm0, %v299_v36  ;;  %v3304_v45 = vld [vmem:[#allocation2 + $0x38] sm:$0xff]  ;;  %v3319_v48 = vld [vmem:[#allocation2 + $0x81] sm:$0xff] }
  0x3f   : > { %387 = vst.msk [vmem:[#allocation2 + $0x159] sm:$0xff] %vm303_vm0, %v298_v37  ;;  %389 = vst.msk [vmem:[#allocation2 + $0x171] sm:$0xff] %vm303_vm0, %v300_v39  ;;  %v3310_v47 = vld [vmem:[#allocation2 + $0x91] sm:$0xff]  ;;  %v3321_v50 = vld [vmem:[#allocation2 + $0xa9] sm:$0xff] }
  0x40   : > { %426 = vst.msk [vmem:[#allocation3 + $0x10] sm:$0xff] %vm303_vm0, %v3298_v43  ;;  %427 = vst.msk [vmem:[#allocation3 + $0x18] sm:$0xff] %vm303_vm0, %v3296_v42  ;;  %v3324_v51 = vld [vmem:[#allocation2 + $0x48] sm:$0xff]  ;;  %v3326_v52 = vld [vmem:[#allocation2 + $0x60] sm:$0xff] }
  0x41   : > { %530 = vrot.lane.b32.xlu1 %v3266_v31, %s3041_s12  ;;  %536 = vrot.lane.b32.xlu0 %v3270_v32, %s3041_s12  ;;  %424 = vst.msk [vmem:[#allocation3] sm:$0xff] %vm303_vm0, %v392_v46  ;;  %428 = vst.msk [vmem:[#allocation3 + $0x20] sm:$0xff] %vm303_vm0, %v3302_v44  ;;  %v3334_v53 = vld [vmem:[#allocation2 + $0x50] sm:$0xff]  ;;  %v3336_v54 = vld [vmem:[#allocation2 + $0x78] sm:$0xff] }
  0x42   : > { %429 = vst.msk [vmem:[#allocation3 + $0x28] sm:$0xff] %vm303_vm0, %v3304_v45  ;;  %425 = vst.msk [vmem:[#allocation3 + $0x8] sm:$0xff] %vm303_vm0, %v393_v49  ;;  %v3338_v55 = vld [vmem:[#allocation2 + $0x68] sm:$0xff]  ;;  %v3340_v56 = vld [vmem:[#allocation2 + $0x99] sm:$0xff] }
  0x43   : > { %430 = vst.msk [vmem:[#allocation3 + $0x30] sm:$0xff] %vm303_vm0, %v3324_v51  ;;  %432 = vst.msk [vmem:[#allocation3 + $0x40] sm:$0xff] %vm303_vm0, %v3326_v52  ;;  %v3348_v57 = vld [vmem:[#allocation2 + $0x90] sm:$0xff]  ;;  %v3350_v58 = vld [vmem:[#allocation2 + $0x80] sm:$0xff] }
  0x44   : > { %431 = vst.msk [vmem:[#allocation3 + $0x38] sm:$0xff] %vm303_vm0, %v3334_v53  ;;  %434 = vst.msk [vmem:[#allocation3 + $0x50] sm:$0xff] %vm303_vm0, %v3336_v54  ;;  %v3352_v59 = vld [vmem:[#allocation2 + $0xa8] sm:$0xff]  ;;  %v3362_v60 = vld [vmem:[#allocation2 + $0x98] sm:$0xff] }
  0x45   : > { %534 = vrot.lane.b32.xlu1 %v3282_v38, %s3041_s12  ;;  %540 = vrot.lane.b32.xlu0 %v3290_v40, %s3041_s12  ;;  %433 = vst.msk [vmem:[#allocation3 + $0x48] sm:$0xff] %vm303_vm0, %v3338_v55  ;;  %436 = vst.msk [vmem:[#allocation3 + $0x60] sm:$0xff] %vm303_vm0, %v3348_v57  ;;  %v3364_v61 = vld [vmem:[#allocation2 + $0xc0] sm:$0xff]  ;;  %v3366_v62 = vld [vmem:[#allocation2 + $0xb0] sm:$0xff] }
  0x46   : > { %435 = vst.msk [vmem:[#allocation3 + $0x58] sm:$0xff] %vm303_vm0, %v3350_v58  ;;  %438 = vst.msk [vmem:[#allocation3 + $0x70] sm:$0xff] %vm303_vm0, %v3352_v59  ;;  %v3374_v63 = vld [vmem:[#allocation2 + $0xd8] sm:$0xff]  ;;  %v3376_v0 = vld [vmem:[#allocation2 + $0xc8] sm:$0xff] }
  0x47   : > { %437 = vst.msk [vmem:[#allocation3 + $0x68] sm:$0xff] %vm303_vm0, %v3362_v60  ;;  %440 = vst.msk [vmem:[#allocation3 + $0x80] sm:$0xff] %vm303_vm0, %v3364_v61  ;;  %v3378_v1 = vld [vmem:[#allocation2 + $0xf0] sm:$0xff]  ;;  %v3388_v2 = vld [vmem:[#allocation2 + $0xe0] sm:$0xff] }
  0x48   : > { %439 = vst.msk [vmem:[#allocation3 + $0x78] sm:$0xff] %vm303_vm0, %v3366_v62  ;;  %442 = vst.msk [vmem:[#allocation3 + $0x90] sm:$0xff] %vm303_vm0, %v3374_v63  ;;  %v3390_v3 = vld [vmem:[#allocation2 + $0xc1] sm:$0xff]  ;;  %v3400_v5 = vld [vmem:[#allocation2 + $0xb1] sm:$0xff] }
  0x49   : > { %538 = vrot.lane.b32.xlu1 %v3294_v41, %s3041_s12  ;;  %544 = vrot.lane.b32.xlu0 %v3310_v47, %s3041_s12  ;;  %441 = vst.msk [vmem:[#allocation3 + $0x88] sm:$0xff] %vm303_vm0, %v3376_v0  ;;  %444 = vst.msk [vmem:[#allocation3 + $0xa0] sm:$0xff] %vm303_vm0, %v3378_v1  ;;  %v3394_v4 = vld [vmem:[#allocation2 + $0x108] sm:$0xff]  ;;  %v3402_v6 = vld [vmem:[#allocation2 + $0xf8] sm:$0xff] }
  0x4a   : > { %443 = vst.msk [vmem:[#allocation3 + $0x98] sm:$0xff] %vm303_vm0, %v3388_v2  ;;  %446 = vst.msk [vmem:[#allocation3 + $0xb0] sm:$0xff] %vm303_vm0, %v3394_v4  ;;  %v474_v7 = vld [vmem:[#allocation2 + $0xd9] sm:$0xff]  ;;  %v3414_v9 = vld [vmem:[#allocation2 + $0xc9] sm:$0xff] }
  0x4b   : > { %445 = vst.msk [vmem:[#allocation3 + $0xa8] sm:$0xff] %vm303_vm0, %v3402_v6  ;;  %v3408_v8 = vld [vmem:[#allocation2 + $0x120] sm:$0xff]  ;;  %v3416_v10 = vld [vmem:[#allocation2 + $0x110] sm:$0xff]  ;;  %v418_v12 = vld [vmem:[#allocation2 + $0x138] sm:$0xff] }
  0x4c   : > { %448 = vst.msk [vmem:[#allocation3 + $0xc0] sm:$0xff] %vm303_vm0, %v3408_v8  ;;  %447 = vst.msk [vmem:[#allocation3 + $0xb8] sm:$0xff] %vm303_vm0, %v3416_v10  ;;  %v476_v11 = vld [vmem:[#allocation2 + $0xf1] sm:$0xff]  ;;  %v475_v13 = vld [vmem:[#allocation2 + $0xe1] sm:$0xff] }
  0x4d   : > { %542 = vrot.lane.b32.xlu1 %v3319_v48, %s3041_s12  ;;  %548 = vrot.lane.b32.xlu0 %v3321_v50, %s3041_s12  ;;  %450 = vst.msk [vmem:[#allocation3 + $0xd0] sm:$0xff] %vm303_vm0, %v418_v12  ;;  %v3424_v14 = vld [vmem:[#allocation2 + $0x128] sm:$0xff]  ;;  %v420_v16 = vld [vmem:[#allocation2 + $0x150] sm:$0xff]  ;;  %v477_v17 = vld [vmem:[#allocation2 + $0xf9] sm:$0xff] }
  0x4e   : > { %449 = vst.msk [vmem:[#allocation3 + $0xc8] sm:$0xff] %vm303_vm0, %v3424_v14  ;;  %v478_v15 = vld [vmem:[#allocation2 + $0x109] sm:$0xff]  ;;  %452 = vst.msk [vmem:[#allocation3 + $0xe0] sm:$0xff] %vm303_vm0, %v420_v16  ;;  %v3431_v18 = vld [vmem:[#allocation2 + $0x140] sm:$0xff] }
  0x4f   : > { %451 = vst.msk [vmem:[#allocation3 + $0xd8] sm:$0xff] %vm303_vm0, %v3431_v18  ;;  %v480_v19 = vld [vmem:[#allocation2 + $0x121] sm:$0xff]  ;;  %v479_v21 = vld [vmem:[#allocation2 + $0x111] sm:$0xff]  ;;  %v482_v23 = vld [vmem:[#allocation2 + $0x139] sm:$0xff] }
  0x50   : > { %v422_v20 = vld [vmem:[#allocation2 + $0x168] sm:$0xff]  ;;  %v421_v22 = vld [vmem:[#allocation2 + $0x158] sm:$0xff]  ;;  %v423_v28 = vld [vmem:[#allocation2 + $0x170] sm:$0xff] }
  0x51   : > { %546 = vrot.lane.b32.xlu1 %v3340_v56, %s3041_s12  ;;  %552 = vrot.lane.b32.xlu0 %v3390_v3, %s3041_s12  ;;  %454 = vst.msk [vmem:[#allocation3 + $0xf0] sm:$0xff] %vm303_vm0, %v422_v20  ;;  %453 = vst.msk [vmem:[#allocation3 + $0xe8] sm:$0xff] %vm303_vm0, %v421_v22  ;;  %v481_v24 = vld [vmem:[#allocation2 + $0x129] sm:$0xff]  ;;  %v484_v29 = vld [vmem:[#allocation2 + $0x151] sm:$0xff] }
  0x52   : > { %455 = vst.msk [vmem:[#allocation3 + $0xf8] sm:$0xff] %vm303_vm0, %v423_v28  ;;  %v483_v33 = vld [vmem:[#allocation2 + $0x141] sm:$0xff]  ;;  %v486_v34 = vld [vmem:[#allocation2 + $0x169] sm:$0xff]  ;;  %v485_v35 = vld [vmem:[#allocation2 + $0x159] sm:$0xff] }
  0x53   : > { %v649_v36 = vld [vmem:[#allocation2 + $0x2] sm:$0xff]  ;;  %v487_v37 = vld [vmem:[#allocation2 + $0x171] sm:$0xff]  ;;  %v651_v39 = vld [vmem:[#allocation2 + $0x1a] sm:$0xff] }
  0x54   : > { %v650_v46 = vld [vmem:[#allocation2 + $0xa] sm:$0xff]  ;;  %v653_v49 = vld [vmem:[#allocation2 + $0x32] sm:$0xff]  ;;  %v654_v12 = vld [vmem:[#allocation2 + $0x3a] sm:$0xff] }
  0x55   : > { %550 = vrot.lane.b32.xlu1 %v3400_v5, %s3041_s12  ;;  %556 = vrot.lane.b32.xlu0 %v474_v7, %s3041_s12  ;;  %v652_v7 = vld [vmem:[#allocation2 + $0x22] sm:$0xff]  ;;  %v3465_v16 = vld [vmem:[#allocation2 + $0x7a] sm:$0xff] }
  0x59   : > { %554 = vrot.lane.b32.xlu1 %v3414_v9, %s3041_s12  ;;  %560 = vrot.lane.b32.xlu0 %v476_v11, %s3041_s12  ;;  %v3453_v11 = vld [vmem:[#allocation2 + $0x4a] sm:$0xff] }
  0x5d   : > { %558 = vrot.lane.b32.xlu1 %v475_v13, %s3041_s12  ;;  %564 = vrot.lane.b32.xlu0 %v478_v15, %s3041_s12  ;;  %v3458_v13 = vld [vmem:[#allocation2 + $0x62] sm:$0xff]  ;;  %v3461_v15 = vld [vmem:[#allocation2 + $0x52] sm:$0xff] }
  0x61   : > { %562 = vrot.lane.b32.xlu1 %v477_v17, %s3041_s12  ;;  %568 = vrot.lane.b32.xlu0 %v480_v19, %s3041_s12  ;;  %v3469_v17 = vld [vmem:[#allocation2 + $0x6a] sm:$0xff] }
  0x65   : > { %566 = vrot.lane.b32.xlu1 %v479_v21, %s3041_s12  ;;  %572 = vrot.lane.b32.xlu0 %v482_v23, %s3041_s12 }
  0x69   : > { %570 = vrot.lane.b32.xlu1 %v481_v24, %s3041_s12  ;;  %576 = vrot.lane.b32.xlu0 %v484_v29, %s3041_s12 }
  0x6d   : > { %574 = vrot.lane.b32.xlu1 %v483_v33, %s3041_s12  ;;  %580 = vrot.lane.b32.xlu0 %v486_v34, %s3041_s12 }
  0x71   : > { %578 = vrot.lane.b32.xlu1 %v485_v35, %s3041_s12  ;;  %713 = vrot.lane.b32.xlu0 %v649_v36, %s3042_s13 }
  0x75   : > { %582 = vrot.lane.b32.xlu1 %v487_v37, %s3041_s12  ;;  %717 = vrot.lane.b32.xlu0 %v651_v39, %s3042_s13 }
  0x79   : > { %715 = vrot.lane.b32.xlu1 %v650_v46, %s3042_s13  ;;  %721 = vrot.lane.b32.xlu0 %v653_v49, %s3042_s13 }
  0x7d   : > { %719 = vrot.lane.b32.xlu1 %v652_v7, %s3042_s13  ;;  %725 = vrot.lane.b32.xlu0 %v3453_v11, %s3042_s13 }
  0x81   : > { %723 = vrot.lane.b32.xlu1 %v654_v12, %s3042_s13  ;;  %729 = vrot.lane.b32.xlu0 %v3458_v13, %s3042_s13 }
  0x85   : > { %727 = vrot.lane.b32.xlu1 %v3461_v15, %s3042_s13  ;;  %733 = vrot.lane.b32.xlu0 %v3465_v16, %s3042_s13 }
  0x89   : > { %731 = vrot.lane.b32.xlu1 %v3469_v17, %s3042_s13  ;;  %908 = vrot.lane.b32.xlu0 %v3296_v42, %s3043_s14 }
  0x8d   : > { %906 = vrot.lane.b32.xlu1 %v3298_v43, %s3043_s14  ;;  %1101 = vrot.lane.b32.xlu0 %v3254_v27, %s3044_s15  ;;  %v2035_v27 = vld [vmem:[%s4474_s3 + $0x10] sm:$0xff]  ;;  %v2033_v43 = vld [vmem:[%s4474_s3] sm:$0xff] }
  0x90   : > { %v521_v42 = vpop.permute.xlu0 %520 }
  0x91   : > { %1099 = vrot.lane.b32.xlu1 %v3245_v25, %s3044_s15  ;;  %1294 = vrot.lane.b32.xlu0 %v652_v7, %s3045_s16  ;;  %v2036_v25 = vld [vmem:[%s4474_s3 + $0x18] sm:$0x7]  ;;  %617 = vst.msk [vmem:[#allocation3] sm:$0xff] %vm616_vm3, %v521_v42 }
  0x92   : > { %2831 = vmatprep.subr.msk.mxu0 %vm2134_vm2, %v2036_v25  ;;  %2887 = vmatprep.subr.msk.mxu1 %vm2134_vm2, %v2036_v25 }
  0x93   : > { %2832 = vmatpush3.msk.msra.mxu0 %vm2134_vm2, %v2036_v25  ;;  %2891 = vmatpush3.msk.msra.mxu1 %vm2134_vm2, %v2036_v25 }
  0x94   : > { %2833 = vmatprep.subr.mxu0 %v2035_v27  ;;  %2888 = vmatprep.subr.mxu1 %v2035_v27 }
  0x95   : > { %1292 = vrot.lane.b32.xlu1 %v651_v39, %s3045_s16  ;;  %910 = vrot.lane.b32.xlu0 %v3302_v44, %s3043_s14 }
  0x96   : > { %2834 = vmatpush3.msra.mxu0 %v2035_v27  ;;  %2892 = vmatpush3.msra.mxu1 %v2035_v27 }
  0x99   : > { %1486 = vrot.lane.b32.xlu1 %v3302_v44, %s3046_s17  ;;  %1679 = vrot.lane.b32.xlu0 %v3247_v26, %s3047_s18 }
  0x9d   : > { %1488 = vrot.lane.b32.xlu1 %v3304_v45, %s3046_s17  ;;  %1103 = vrot.lane.b32.xlu0 %v3247_v26, %s3044_s15  ;;  %v2034_v26 = vld [vmem:[%s4474_s3 + $0x8] sm:$0xff] }
  0x9e   : > { %2835 = vmatprep.subr.mxu0 %v2034_v26  ;;  %2889 = vmatprep.subr.mxu1 %v2034_v26 }
  0x9f   : > { %2836 = vmatpush3.msra.mxu0 %v2034_v26  ;;  %2893 = vmatpush3.msra.mxu1 %v2034_v26 }
  0xa0   : > { %2837 = vmatprep.subr.mxu0 %v2033_v43  ;;  %2890 = vmatprep.subr.mxu1 %v2033_v43 }
  0xa1   : > { %912 = vrot.lane.b32.xlu1 %v3304_v45, %s3043_s14  ;;  %1872 = vrot.lane.b32.xlu0 %v653_v49, %s3048_s27 }
  0xa2   : > { %2838 = vmatpush3.msra.mxu0 %v2033_v43  ;;  %v523_v44 = vpop.permute.xlu0 %522  ;;  %2894 = vmatpush3.msra.mxu1 %v2033_v43 }
  0xa3   : > { %618 = vst.msk [vmem:[#allocation3 + $0x8] sm:$0xff] %vm616_vm3, %v523_v44 }
  0xa5   : > { %1681 = vrot.lane.b32.xlu1 %v3266_v31, %s3047_s18  ;;  %1296 = vrot.lane.b32.xlu0 %v653_v49, %s3045_s16 }
  0xa9   : > { %1105 = vrot.lane.b32.xlu1 %v3266_v31, %s3044_s15  ;;  %1298 = vrot.lane.b32.xlu0 %v654_v12, %s3045_s16 }
  0xab   : > { %v525_v45 = vpop.permute.xlu1 %524  ;;  %v529_v19 = vpop.permute.xlu0 %528 }
  0xac   : > { %619 = vst.msk [vmem:[#allocation3 + $0x10] sm:$0xff] %vm616_vm3, %v525_v45  ;;  %621 = vst.msk [vmem:[#allocation3 + $0x20] sm:$0xff] %vm616_vm3, %v529_v19 }
  0xad   : > { %1874 = vrot.lane.b32.xlu1 %v654_v12, %s3048_s27  ;;  %914 = vrot.lane.b32.xlu0 %v3324_v51, %s3043_s14 }
  0xaf   : > { %v527_v20 = vpop.permute.xlu1 %526  ;;  %v533_v31 = vpop.permute.xlu0 %532 }
  0xb0   : > { %620 = vst.msk [vmem:[#allocation3 + $0x18] sm:$0xff] %vm616_vm3, %v527_v20  ;;  %623 = vst.msk [vmem:[#allocation3 + $0x30] sm:$0xff] %vm616_vm3, %v533_v31 }
  0xb1   : > { %1490 = vrot.lane.b32.xlu1 %v3324_v51, %s3046_s17  ;;  %1683 = vrot.lane.b32.xlu0 %v3262_v30, %s3047_s18 }
  0xb3   : > { %v531_v21 = vpop.permute.xlu1 %530  ;;  %v537_v22 = vpop.permute.xlu0 %536 }
  0xb4   : > { %622 = vst.msk [vmem:[#allocation3 + $0x28] sm:$0xff] %vm616_vm3, %v531_v21  ;;  %625 = vst.msk [vmem:[#allocation3 + $0x40] sm:$0xff] %vm616_vm3, %v537_v22  ;;  %v1817_v21 = vld [vmem:[#allocation2 + $0x9a] sm:$0xff] }
  0xb5   : > { %1492 = vrot.lane.b32.xlu1 %v3334_v53, %s3046_s17  ;;  %1107 = vrot.lane.b32.xlu0 %v3262_v30, %s3044_s15 }
  0xb7   : > { %v535_v23 = vpop.permute.xlu1 %534  ;;  %v541_v51 = vpop.permute.xlu0 %540 }
  0xb8   : > { %624 = vst.msk [vmem:[#allocation3 + $0x38] sm:$0xff] %vm616_vm3, %v535_v23  ;;  %627 = vst.msk [vmem:[#allocation3 + $0x50] sm:$0xff] %vm616_vm3, %v541_v51 }
  0xb9   : > { %916 = vrot.lane.b32.xlu1 %v3334_v53, %s3043_s14  ;;  %1876 = vrot.lane.b32.xlu0 %v3453_v11, %s3048_s27 }
  0xbb   : > { %v539_v24 = vpop.permute.xlu1 %538  ;;  %v545_v28 = vpop.permute.xlu0 %544 }
  0xbc   : > { %626 = vst.msk [vmem:[#allocation3 + $0x48] sm:$0xff] %vm616_vm3, %v539_v24  ;;  %629 = vst.msk [vmem:[#allocation3 + $0x60] sm:$0xff] %vm616_vm3, %v545_v28 }
  0xbd   : > { %1685 = vrot.lane.b32.xlu1 %v3282_v38, %s3047_s18  ;;  %1300 = vrot.lane.b32.xlu0 %v3453_v11, %s3045_s16 }
  0xbf   : > { %v543_v30 = vpop.permute.xlu1 %542  ;;  %v549_v53 = vpop.permute.xlu0 %548 }
  0xc0   : > { %628 = vst.msk [vmem:[#allocation3 + $0x58] sm:$0xff] %vm616_vm3, %v543_v30  ;;  %631 = vst.msk [vmem:[#allocation3 + $0x70] sm:$0xff] %vm616_vm3, %v549_v53 }
  0xc1   : > { %1109 = vrot.lane.b32.xlu1 %v3282_v38, %s3044_s15  ;;  %1302 = vrot.lane.b32.xlu0 %v3461_v15, %s3045_s16 }
  0xc3   : > { %v547_v29 = vpop.permute.xlu1 %546  ;;  %v553_v33 = vpop.permute.xlu0 %552 }
  0xc4   : > { %630 = vst.msk [vmem:[#allocation3 + $0x68] sm:$0xff] %vm616_vm3, %v547_v29  ;;  %633 = vst.msk [vmem:[#allocation3 + $0x80] sm:$0xff] %vm616_vm3, %v553_v33 }
  0xc5   : > { %1878 = vrot.lane.b32.xlu1 %v3461_v15, %s3048_s27  ;;  %918 = vrot.lane.b32.xlu0 %v3326_v52, %s3043_s14 }
  0xc7   : > { %v551_v34 = vpop.permute.xlu1 %550  ;;  %v557_v38 = vpop.permute.xlu0 %556 }
  0xc8   : > { %632 = vst.msk [vmem:[#allocation3 + $0x78] sm:$0xff] %vm616_vm3, %v551_v34  ;;  %635 = vst.msk [vmem:[#allocation3 + $0x90] sm:$0xff] %vm616_vm3, %v557_v38  ;;  %v1818_v38 = vld [vmem:[#allocation2 + $0xaa] sm:$0xff] }
  0xc9   : > { %1494 = vrot.lane.b32.xlu1 %v3326_v52, %s3046_s17  ;;  %1687 = vrot.lane.b32.xlu0 %v3270_v32, %s3047_s18 }
  0xcb   : > { %v555_v35 = vpop.permute.xlu1 %554  ;;  %v561_v36 = vpop.permute.xlu0 %560 }
  0xcc   : > { %634 = vst.msk [vmem:[#allocation3 + $0x88] sm:$0xff] %vm616_vm3, %v555_v35  ;;  %637 = vst.msk [vmem:[#allocation3 + $0xa0] sm:$0xff] %vm616_vm3, %v561_v36  ;;  %v1819_v36 = vld [vmem:[#allocation2 + $0xb2] sm:$0xff] }
  0xcd   : > { %1496 = vrot.lane.b32.xlu1 %v3338_v55, %s3046_s17  ;;  %1111 = vrot.lane.b32.xlu0 %v3270_v32, %s3044_s15 }
  0xcf   : > { %v559_v37 = vpop.permute.xlu1 %558  ;;  %v565_v52 = vpop.permute.xlu0 %564 }
  0xd0   : > { %636 = vst.msk [vmem:[#allocation3 + $0x98] sm:$0xff] %vm616_vm3, %v559_v37  ;;  %639 = vst.msk [vmem:[#allocation3 + $0xb0] sm:$0xff] %vm616_vm3, %v565_v52 }
  0xd1   : > { %920 = vrot.lane.b32.xlu1 %v3338_v55, %s3043_s14  ;;  %1880 = vrot.lane.b32.xlu0 %v3458_v13, %s3048_s27 }
  0xd3   : > { %v563_v39 = vpop.permute.xlu1 %562  ;;  %v569_v46 = vpop.permute.xlu0 %568 }
  0xd4   : > { %638 = vst.msk [vmem:[#allocation3 + $0xa8] sm:$0xff] %vm616_vm3, %v563_v39  ;;  %641 = vst.msk [vmem:[#allocation3 + $0xc0] sm:$0xff] %vm616_vm3, %v569_v46 }
  0xd5   : > { %1689 = vrot.lane.b32.xlu1 %v3294_v41, %s3047_s18  ;;  %1304 = vrot.lane.b32.xlu0 %v3458_v13, %s3045_s16 }
  0xd7   : > { %v567_v32 = vpop.permute.xlu1 %566  ;;  %v573_v55 = vpop.permute.xlu0 %572 }
  0xd8   : > { %640 = vst.msk [vmem:[#allocation3 + $0xb8] sm:$0xff] %vm616_vm3, %v567_v32  ;;  %643 = vst.msk [vmem:[#allocation3 + $0xd0] sm:$0xff] %vm616_vm3, %v573_v55 }
  0xd9   : > { %1113 = vrot.lane.b32.xlu1 %v3294_v41, %s3044_s15  ;;  %1306 = vrot.lane.b32.xlu0 %v3469_v17, %s3045_s16 }
  0xdb   : > { %v571_v49 = vpop.permute.xlu1 %570  ;;  %v577_v7 = vpop.permute.xlu0 %576 }
  0xdc   : > { %642 = vst.msk [vmem:[#allocation3 + $0xc8] sm:$0xff] %vm616_vm3, %v571_v49  ;;  %645 = vst.msk [vmem:[#allocation3 + $0xe0] sm:$0xff] %vm616_vm3, %v577_v7 }
  0xdd   : > { %1882 = vrot.lane.b32.xlu1 %v3469_v17, %s3048_s27  ;;  %922 = vrot.lane.b32.xlu0 %v3336_v54, %s3043_s14 }
  0xdf   : > { %v575_v11 = vpop.permute.xlu1 %574  ;;  %v581_v41 = vpop.permute.xlu0 %580 }
  0xe0   : > { %644 = vst.msk [vmem:[#allocation3 + $0xd8] sm:$0xff] %vm616_vm3, %v575_v11  ;;  %647 = vst.msk [vmem:[#allocation3 + $0xf0] sm:$0xff] %vm616_vm3, %v581_v41 }
  0xe1   : > { %1498 = vrot.lane.b32.xlu1 %v3336_v54, %s3046_s17  ;;  %1691 = vrot.lane.b32.xlu0 %v3290_v40, %s3047_s18 }
  0xe3   : > { %v579_v12 = vpop.permute.xlu1 %578  ;;  %v714_v13 = vpop.permute.xlu0 %713 }
  0xe4   : > { %646 = vst.msk [vmem:[#allocation3 + $0xe8] sm:$0xff] %vm616_vm3, %v579_v12 }
  0xe5   : > { %1500 = vrot.lane.b32.xlu1 %v3350_v58, %s3046_s17  ;;  %810 = vst.msk [vmem:[#allocation3] sm:$0xff] %vm809_vm4, %v714_v13  ;;  %1115 = vrot.lane.b32.xlu0 %v3290_v40, %s3044_s15  ;;  %v1049_v13 = vld [vmem:[#allocation2 + $0xc1] sm:$0xff] }
  0xe7   : > { %v583_v15 = vpop.permute.xlu1 %582  ;;  %v718_v54 = vpop.permute.xlu0 %717 }
  0xe8   : > { %648 = vst.msk [vmem:[#allocation3 + $0xf8] sm:$0xff] %vm616_vm3, %v583_v15 }
  0xe9   : > { %924 = vrot.lane.b32.xlu1 %v3350_v58, %s3043_s14  ;;  %812 = vst.msk [vmem:[#allocation3 + $0x10] sm:$0xff] %vm809_vm4, %v718_v54  ;;  %1884 = vrot.lane.b32.xlu0 %v3465_v16, %s3048_s27  ;;  %v1237_v58 = vld [vmem:[#allocation2 + $0x82] sm:$0xff] }
  0xeb   : > { %v716_v17 = vpop.permute.xlu1 %715  ;;  %v722_v25 = vpop.permute.xlu0 %721 }
  0xec   : > { %811 = vst.msk [vmem:[#allocation3 + $0x8] sm:$0xff] %vm809_vm4, %v716_v17  ;;  %814 = vst.msk [vmem:[#allocation3 + $0x20] sm:$0xff] %vm809_vm4, %v722_v25  ;;  %v1821_v17 = vld [vmem:[#allocation2 + $0xca] sm:$0xff] }
  0xed   : > { %1693 = vrot.lane.b32.xlu1 %v3319_v48, %s3047_s18  ;;  %1308 = vrot.lane.b32.xlu0 %v3465_v16, %s3045_s16 }
  0xef   : > { %v720_v40 = vpop.permute.xlu1 %719  ;;  %v726_v27 = vpop.permute.xlu0 %725 }
  0xf0   : > { %813 = vst.msk [vmem:[#allocation3 + $0x18] sm:$0xff] %vm809_vm4, %v720_v40  ;;  %816 = vst.msk [vmem:[#allocation3 + $0x30] sm:$0xff] %vm809_vm4, %v726_v27 }
  0xf1   : > { %1117 = vrot.lane.b32.xlu1 %v3319_v48, %s3044_s15  ;;  %1310 = vrot.lane.b32.xlu0 %v1237_v58, %s3045_s16 }
  0xf3   : > { %v724_v26 = vpop.permute.xlu1 %723  ;;  %v730_v42 = vpop.permute.xlu0 %729 }
  0xf4   : > { %815 = vst.msk [vmem:[#allocation3 + $0x28] sm:$0xff] %vm809_vm4, %v724_v26  ;;  %818 = vst.msk [vmem:[#allocation3 + $0x40] sm:$0xff] %vm809_vm4, %v730_v42 }
  0xf5   : > { %1886 = vrot.lane.b32.xlu1 %v1237_v58, %s3048_s27  ;;  %735 = vrot.lane.b32.xlu0 %v1237_v58, %s3042_s13 }
  0xf7   : > { %v728_v16 = vpop.permute.xlu1 %727  ;;  %v734_v43 = vpop.permute.xlu0 %733 }
  0xf8   : > { %817 = vst.msk [vmem:[#allocation3 + $0x38] sm:$0xff] %vm809_vm4, %v728_v16  ;;  %820 = vst.msk [vmem:[#allocation3 + $0x50] sm:$0xff] %vm809_vm4, %v734_v43 }
  0xf9   : > { %1502 = vrot.lane.b32.xlu1 %v3348_v57, %s3046_s17  ;;  %1504 = vrot.lane.b32.xlu0 %v3362_v60, %s3046_s17 }
  0xfb   : > { %v732_v48 = vpop.permute.xlu1 %731  ;;  %v909_v44 = vpop.permute.xlu0 %908 }
  0xfc   : > { %819 = vst.msk [vmem:[#allocation3 + $0x48] sm:$0xff] %vm809_vm4, %v732_v48 }
  0xfd   : > { %926 = vrot.lane.b32.xlu1 %v3348_v57, %s3043_s14  ;;  %1004 = vst.msk [vmem:[#allocation3 + $0x8] sm:$0xff] %vm1002_vm5, %v909_v44  ;;  %928 = vrot.lane.b32.xlu0 %v3362_v60, %s3043_s14  ;;  %v1816_v60 = vld [vmem:[#allocation2 + $0x92] sm:$0xff] }
  0xfe   : > { %v1629_v44 = vld [vmem:[#allocation2 + $0xd9] sm:$0xff] }
  0xff   : > { %v907_v45 = vpop.permute.xlu1 %906  ;;  %v1102_v19 = vpop.permute.xlu0 %1101 }
 0x100   : > { %1003 = vst.msk [vmem:[#allocation3] sm:$0xff] %vm1002_vm5, %v907_v45 }
 0x101   : > { %1695 = vrot.lane.b32.xlu1 %v3310_v47, %s3047_s18  ;;  %1197 = vst.msk [vmem:[#allocation3 + $0x8] sm:$0xff] %vm1195_vm6, %v1102_v19  ;;  %1697 = vrot.lane.b32.xlu0 %v3340_v56, %s3047_s18  ;;  %v1630_v19 = vld [vmem:[#allocation2 + $0xe1] sm:$0xff] }
 0x103   : > { %v1100_v20 = vpop.permute.xlu1 %1099  ;;  %v1295_v57 = vpop.permute.xlu0 %1294 }
 0x104   : > { %1196 = vst.msk [vmem:[#allocation3] sm:$0xff] %vm1195_vm6, %v1100_v20 }
 0x105   : > { %1119 = vrot.lane.b32.xlu1 %v3310_v47, %s3044_s15  ;;  %1390 = vst.msk [vmem:[#allocation3 + $0x8] sm:$0xff] %vm1388_vm7, %v1295_v57  ;;  %1121 = vrot.lane.b32.xlu0 %v3340_v56, %s3044_s15 }
 0x107   : > { %v1293_v31 = vpop.permute.xlu1 %1292  ;;  %v911_v22 = vpop.permute.xlu0 %910 }
 0x108   : > { %1389 = vst.msk [vmem:[#allocation3] sm:$0xff] %vm1388_vm7, %v1293_v31 }
 0x109   : > { %1888 = vrot.lane.b32.xlu1 %v1816_v60, %s3048_s27  ;;  %1005 = vst.msk [vmem:[#allocation3 + $0x10] sm:$0xff] %vm1002_vm5, %v911_v22  ;;  %1890 = vrot.lane.b32.xlu0 %v1817_v21, %s3048_s27 }
 0x10b   : > { %v1487_v23 = vpop.permute.xlu1 %1486  ;;  %v1680_v47 = vpop.permute.xlu0 %1679 }
 0x10c   : > { %1583 = vst.msk [vmem:[#allocation3] sm:$0xff] %vm1582_vm8, %v1487_v23 }
 0x10d   : > { %1312 = vrot.lane.b32.xlu1 %v1816_v60, %s3045_s16  ;;  %1776 = vst.msk [vmem:[#allocation3] sm:$0xff] %vm1775_vm9, %v1680_v47  ;;  %1314 = vrot.lane.b32.xlu0 %v1817_v21, %s3045_s16 }
 0x10f   : > { %v1489_v56 = vpop.permute.xlu1 %1488  ;;  %v1104_v51 = vpop.permute.xlu0 %1103 }
 0x110   : > { %1584 = vst.msk [vmem:[#allocation3 + $0x8] sm:$0xff] %vm1582_vm8, %v1489_v56 }
 0x111   : > { %737 = vrot.lane.b32.xlu1 %v1816_v60, %s3042_s13  ;;  %1198 = vst.msk [vmem:[#allocation3 + $0x10] sm:$0xff] %vm1195_vm6, %v1104_v51  ;;  %739 = vrot.lane.b32.xlu0 %v1817_v21, %s3042_s13  ;;  %v1823_v21 = vld [vmem:[#allocation2 + $0xe2] sm:$0xff] }
 0x113   : > { %v913_v24 = vpop.permute.xlu1 %912  ;;  %v1873_v28 = vpop.permute.xlu0 %1872 }
 0x114   : > { %1006 = vst.msk [vmem:[#allocation3 + $0x18] sm:$0xff] %vm1002_vm5, %v913_v24 }
 0x115   : > { %1506 = vrot.lane.b32.xlu1 %v3352_v59, %s3046_s17  ;;  %1969 = vst.msk [vmem:[#allocation3] sm:$0xff] %vm1968_vm10, %v1873_v28  ;;  %1508 = vrot.lane.b32.xlu0 %v3366_v62, %s3046_s17 }
 0x117   : > { %v1682_v30 = vpop.permute.xlu1 %1681  ;;  %v1297_v53 = vpop.permute.xlu0 %1296 }
 0x118   : > { %1777 = vst.msk [vmem:[#allocation3 + $0x8] sm:$0xff] %vm1775_vm9, %v1682_v30 }
 0x119   : > { %930 = vrot.lane.b32.xlu1 %v3352_v59, %s3043_s14  ;;  %1391 = vst.msk [vmem:[#allocation3 + $0x10] sm:$0xff] %vm1388_vm7, %v1297_v53  ;;  %932 = vrot.lane.b32.xlu0 %v3366_v62, %s3043_s14 }
 0x11b   : > { %v1106_v29 = vpop.permute.xlu1 %1105  ;;  %v1299_v33 = vpop.permute.xlu0 %1298 }
 0x11c   : > { %1199 = vst.msk [vmem:[#allocation3 + $0x18] sm:$0xff] %vm1195_vm6, %v1106_v29  ;;  %v2001_v34 = vld [vmem:[#allocation3] sm:$0xff] }
 0x11d   : > { %1699 = vrot.lane.b32.xlu1 %v3321_v50, %s3047_s18  ;;  %1392 = vst.msk [vmem:[#allocation3 + $0x18] sm:$0xff] %vm1388_vm7, %v1299_v33  ;;  %2839 = vmatprep.mubr.msk.f32.mxu0 %vm2037_vm11, %v2001_v34  ;;  %v1631_v33 = vld [vmem:[#allocation2 + $0xf1] sm:$0xff] }
 0x11e   : > { %1701 = vrot.lane.b32.xlu0 %v3400_v5, %s3047_s18 }
 0x11f   : > { %v1875_v59 = vpop.permute.xlu1 %1874  ;;  %v915_v62 = vpop.permute.xlu0 %914 }
 0x120   : > { %1970 = vst.msk [vmem:[#allocation3 + $0x8] sm:$0xff] %vm1968_vm10, %v1875_v59 }
 0x121   : > { %1123 = vrot.lane.b32.xlu1 %v3321_v50, %s3044_s15  ;;  %1007 = vst.msk [vmem:[#allocation3 + $0x20] sm:$0xff] %vm1002_vm5, %v915_v62  ;;  %v1632_v62 = vld [vmem:[#allocation2 + $0xf9] sm:$0xff] }
 0x122   : > { %1125 = vrot.lane.b32.xlu0 %v3400_v5, %s3044_s15 }
 0x123   : > { %v1491_v35 = vpop.permute.xlu1 %1490  ;;  %v1684_v37 = vpop.permute.xlu0 %1683 }
 0x124   : > { %1585 = vst.msk [vmem:[#allocation3 + $0x10] sm:$0xff] %vm1582_vm8, %v1491_v35 }
 0x125   : > { %1892 = vrot.lane.b32.xlu1 %v1818_v38, %s3048_s27  ;;  %1778 = vst.msk [vmem:[#allocation3 + $0x10] sm:$0xff] %vm1775_vm9, %v1684_v37  ;;  %v1825_v37 = vld [vmem:[#allocation2 + $0xfa] sm:$0xff] }
 0x126   : > { %1894 = vrot.lane.b32.xlu0 %v1819_v36, %s3048_s27 }
 0x127   : > { %v1493_v52 = vpop.permute.xlu1 %1492  ;;  %v2002_v39 = vld [vmem:[#allocation3 + $0x8] sm:$0xff]  ;;  %v1108_v50 = vpop.permute.xlu0 %1107 }
 0x128   : > { %1586 = vst.msk [vmem:[#allocation3 + $0x18] sm:$0xff] %vm1582_vm8, %v1493_v52  ;;  %2840 = vmatmul.mubr.msk.f32.vlgmr.msra.gmra.mxu0 %vm2037_vm11, %v2002_v39 }
 0x129   : > { %1316 = vrot.lane.b32.xlu1 %v1818_v38, %s3045_s16  ;;  %1200 = vst.msk [vmem:[#allocation3 + $0x20] sm:$0xff] %vm1195_vm6, %v1108_v50 }
 0x12a   : > { %1318 = vrot.lane.b32.xlu0 %v1819_v36, %s3045_s16 }
 0x12b   : > { %v917_v5 = vpop.permute.xlu1 %916  ;;  %v1877_v46 = vpop.permute.xlu0 %1876 }
 0x12c   : > { %1008 = vst.msk [vmem:[#allocation3 + $0x28] sm:$0xff] %vm1002_vm5, %v917_v5 }
 0x12d   : > { %741 = vrot.lane.b32.xlu1 %v1818_v38, %s3042_s13  ;;  %1971 = vst.msk [vmem:[#allocation3 + $0x10] sm:$0xff] %vm1968_vm10, %v1877_v46 }
 0x12e   : > { %743 = vrot.lane.b32.xlu0 %v1819_v36, %s3042_s13 }
 0x12f   : > { %v1686_v32 = vpop.permute.xlu1 %1685  ;;  %v1301_v55 = vpop.permute.xlu0 %1300 }
 0x130   : > { %1779 = vst.msk [vmem:[#allocation3 + $0x18] sm:$0xff] %vm1775_vm9, %v1686_v32 }
 0x131   : > { %1510 = vrot.lane.b32.xlu1 %v3364_v61, %s3046_s17  ;;  %1393 = vst.msk [vmem:[#allocation3 + $0x20] sm:$0xff] %vm1388_vm7, %v1301_v55 }
 0x132   : > { %1512 = vrot.lane.b32.xlu0 %v3376_v0, %s3046_s17 }
 0x133   : > { %v1110_v49 = vpop.permute.xlu1 %1109  ;;  %v1303_v7 = vpop.permute.xlu0 %1302 }
 0x134   : > { %1201 = vst.msk [vmem:[#allocation3 + $0x28] sm:$0xff] %vm1195_vm6, %v1110_v49  ;;  %v2003_v11 = vld [vmem:[#allocation3 + $0x10] sm:$0xff] }
 0x135   : > { %934 = vrot.lane.b32.xlu1 %v3364_v61, %s3043_s14  ;;  %1394 = vst.msk [vmem:[#allocation3 + $0x28] sm:$0xff] %vm1388_vm7, %v1303_v7  ;;  %2842 = vmatprep.mubr.msk.f32.mxu0 %vm2037_vm11, %v2003_v11 }
 0x136   : > { %936 = vrot.lane.b32.xlu0 %v3376_v0, %s3043_s14  ;;  %v1820_v0 = vld [vmem:[#allocation2 + $0xc2] sm:$0xff] }
 0x137   : > { %v1879_v41 = vpop.permute.xlu1 %1878  ;;  %v919_v12 = vpop.permute.xlu0 %918 }
 0x138   : > { %1972 = vst.msk [vmem:[#allocation3 + $0x18] sm:$0xff] %vm1968_vm10, %v1879_v41  ;;  %v301_v41 = vld [vmem:[%s3200_s11 + $0xf0] sm:$0xff] }
 0x139   : > { %1703 = vrot.lane.b32.xlu1 %v3390_v3, %s3047_s18  ;;  %1009 = vst.msk [vmem:[#allocation3 + $0x30] sm:$0xff] %vm1002_vm5, %v919_v12 }
 0x13a   : > { %1705 = vrot.lane.b32.xlu0 %v3414_v9, %s3047_s18  ;;  %390 = vst.msk [vmem:[#allocation2 + $0x181] sm:$0xff] %vm303_vm0, %v301_v41 }
 0x13b   : > { %v1495_v61 = vpop.permute.xlu1 %1494  ;;  %v1688_v15 = vpop.permute.xlu0 %1687 }
 0x13c   : > { %1587 = vst.msk [vmem:[#allocation3 + $0x20] sm:$0xff] %vm1582_vm8, %v1495_v61  ;;  %v302_v61 = vld [vmem:[%s3200_s11 + $0xf8] sm:$0xff] }
 0x13d   : > { %1127 = vrot.lane.b32.xlu1 %v1049_v13, %s3044_s15  ;;  %1780 = vst.msk [vmem:[#allocation3 + $0x20] sm:$0xff] %vm1775_vm9, %v1688_v15  ;;  %v1633_v13 = vld [vmem:[#allocation2 + $0x109] sm:$0xff] }
 0x13e   : > { %1129 = vrot.lane.b32.xlu0 %v3414_v9, %s3044_s15  ;;  %391 = vst.msk [vmem:[#allocation2 + $0x189] sm:$0xff] %vm303_vm0, %v302_v61 }
 0x13f   : > { %v1497_v54 = vpop.permute.xlu1 %1496  ;;  %v2004_v3 = vld [vmem:[#allocation3 + $0x18] sm:$0xff]  ;;  %v1112_v25 = vpop.permute.xlu0 %1111 }
 0x140   : > { %1588 = vst.msk [vmem:[#allocation3 + $0x28] sm:$0xff] %vm1582_vm8, %v1497_v54  ;;  %2843 = vmatmul.mubr.msk.f32.gmra.mxu0 %vm2037_vm11, %v2004_v3 }
 0x141   : > { %1896 = vrot.lane.b32.xlu1 %v1820_v0, %s3048_s27  ;;  %1202 = vst.msk [vmem:[#allocation3 + $0x30] sm:$0xff] %vm1195_vm6, %v1112_v25  ;;  %v1827_v25 = vld [vmem:[#allocation2 + $0x112] sm:$0xff] }
 0x142   : > { %1898 = vrot.lane.b32.xlu0 %v1821_v17, %s3048_s27 }
 0x143   : > { %v921_v40 = vpop.permute.xlu1 %920  ;;  %v1881_v58 = vpop.permute.xlu0 %1880 }
 0x144   : > { %1010 = vst.msk [vmem:[#allocation3 + $0x38] sm:$0xff] %vm1002_vm5, %v921_v40 }
 0x145   : > { %1320 = vrot.lane.b32.xlu1 %v1820_v0, %s3045_s16  ;;  %1973 = vst.msk [vmem:[#allocation3 + $0x20] sm:$0xff] %vm1968_vm10, %v1881_v58 }
 0x146   : > { %1322 = vrot.lane.b32.xlu0 %v1821_v17, %s3045_s16 }
 0x147   : > { %v1690_v9 = vpop.permute.xlu1 %1689  ;;  %v1305_v27 = vpop.permute.xlu0 %1304 }
 0x148   : > { %1781 = vst.msk [vmem:[#allocation3 + $0x28] sm:$0xff] %vm1775_vm9, %v1690_v9 }
 0x149   : > { %745 = vrot.lane.b32.xlu1 %v1820_v0, %s3042_s13  ;;  %1395 = vst.msk [vmem:[#allocation3 + $0x30] sm:$0xff] %vm1388_vm7, %v1305_v27  ;;  %v1634_v0 = vld [vmem:[#allocation2 + $0x111] sm:$0xff] }
 0x14a   : > { %747 = vrot.lane.b32.xlu0 %v1821_v17, %s3042_s13 }
 0x14b   : > { %v1114_v26 = vpop.permute.xlu1 %1113  ;;  %v1307_v42 = vpop.permute.xlu0 %1306 }
 0x14c   : > { %1203 = vst.msk [vmem:[#allocation3 + $0x38] sm:$0xff] %vm1195_vm6, %v1114_v26  ;;  %v2005_v16 = vld [vmem:[#allocation3 + $0x20] sm:$0xff] }
 0x14d   : > { %1514 = vrot.lane.b32.xlu1 %v3374_v63, %s3046_s17  ;;  %1396 = vst.msk [vmem:[#allocation3 + $0x38] sm:$0xff] %vm1388_vm7, %v1307_v42  ;;  %2845 = vmatprep.mubr.msk.f32.mxu0 %vm2037_vm11, %v2005_v16 }
 0x14e   : > { %1516 = vrot.lane.b32.xlu0 %v3388_v2, %s3046_s17 }
 0x14f   : > { %v1883_v43 = vpop.permute.xlu1 %1882  ;;  %v923_v48 = vpop.permute.xlu0 %922 }
 0x150   : > { %1974 = vst.msk [vmem:[#allocation3 + $0x28] sm:$0xff] %vm1968_vm10, %v1883_v43 }
 0x151   : > { %938 = vrot.lane.b32.xlu1 %v3374_v63, %s3043_s14  ;;  %1011 = vst.msk [vmem:[#allocation3 + $0x40] sm:$0xff] %vm1002_vm5, %v923_v48 }
 0x152   : > { %940 = vrot.lane.b32.xlu0 %v3388_v2, %s3043_s14  ;;  %v1822_v2 = vld [vmem:[#allocation2 + $0xda] sm:$0xff] }
 0x153   : > { %v1499_v45 = vpop.permute.xlu1 %1498  ;;  %v1692_v20 = vpop.permute.xlu0 %1691 }
 0x154   : > { %1589 = vst.msk [vmem:[#allocation3 + $0x30] sm:$0xff] %vm1582_vm8, %v1499_v45 }
 0x155   : > { %1707 = vrot.lane.b32.xlu1 %v1629_v44, %s3047_s18  ;;  %1782 = vst.msk [vmem:[#allocation3 + $0x30] sm:$0xff] %vm1775_vm9, %v1692_v20 }
 0x156   : > { %1709 = vrot.lane.b32.xlu0 %v1630_v19, %s3047_s18 }
 0x157   : > { %v1501_v57 = vpop.permute.xlu1 %1500  ;;  %v2006_v60 = vld [vmem:[#allocation3 + $0x28] sm:$0xff]  ;;  %v1116_v63 = vpop.permute.xlu0 %1115 }
 0x158   : > { %1590 = vst.msk [vmem:[#allocation3 + $0x38] sm:$0xff] %vm1582_vm8, %v1501_v57  ;;  %2846 = vmatmul.mubr.msk.f32.gmra.mxu0 %vm2037_vm11, %v2006_v60  ;;  %v1636_v57 = vld [vmem:[#allocation2 + $0x129] sm:$0xff] }
 0x159   : > { %1131 = vrot.lane.b32.xlu1 %v1629_v44, %s3044_s15  ;;  %1204 = vst.msk [vmem:[#allocation3 + $0x40] sm:$0xff] %vm1195_vm6, %v1116_v63 }
 0x15a   : > { %1133 = vrot.lane.b32.xlu0 %v1630_v19, %s3044_s15  ;;  %v1635_v19 = vld [vmem:[#allocation2 + $0x121] sm:$0xff] }
 0x15b   : > { %v925_v31 = vpop.permute.xlu1 %924  ;;  %v1885_v22 = vpop.permute.xlu0 %1884 }
 0x15c   : > { %1012 = vst.msk [vmem:[#allocation3 + $0x48] sm:$0xff] %vm1002_vm5, %v925_v31  ;;  %v1829_v31 = vld [vmem:[#allocation2 + $0x12a] sm:$0xff] }
 0x15d   : > { %1900 = vrot.lane.b32.xlu1 %v1822_v2, %s3048_s27  ;;  %1975 = vst.msk [vmem:[#allocation3 + $0x30] sm:$0xff] %vm1968_vm10, %v1885_v22 }
 0x15e   : > { %1902 = vrot.lane.b32.xlu0 %v1823_v21, %s3048_s27 }
 0x15f   : > { %v1694_v23 = vpop.permute.xlu1 %1693  ;;  %v1309_v47 = vpop.permute.xlu0 %1308 }
 0x160   : > { %1783 = vst.msk [vmem:[#allocation3 + $0x38] sm:$0xff] %vm1775_vm9, %v1694_v23 }
 0x161   : > { %1324 = vrot.lane.b32.xlu1 %v1822_v2, %s3045_s16  ;;  %1397 = vst.msk [vmem:[#allocation3 + $0x40] sm:$0xff] %vm1388_vm7, %v1309_v47 }
 0x162   : > { %1326 = vrot.lane.b32.xlu0 %v1823_v21, %s3045_s16 }
 0x163   : > { %v1118_v56 = vpop.permute.xlu1 %1117  ;;  %v1311_v51 = vpop.permute.xlu0 %1310 }
 0x164   : > { %1205 = vst.msk [vmem:[#allocation3 + $0x48] sm:$0xff] %vm1195_vm6, %v1118_v56  ;;  %v2007_v24 = vld [vmem:[#allocation3 + $0x30] sm:$0xff] }
 0x165   : > { %749 = vrot.lane.b32.xlu1 %v1822_v2, %s3042_s13  ;;  %1398 = vst.msk [vmem:[#allocation3 + $0x48] sm:$0xff] %vm1388_vm7, %v1311_v51  ;;  %2848 = vmatprep.mubr.msk.f32.mxu0 %vm2037_vm11, %v2007_v24  ;;  %v1444_v51 = vld [vmem:[#allocation2 + $0x138] sm:$0xff] }
 0x166   : > { %751 = vrot.lane.b32.xlu0 %v1823_v21, %s3042_s13 }
 0x167   : > { %v1887_v28 = vpop.permute.xlu1 %1886  ;;  %v736_v30 = vpop.permute.xlu0 %735 }
 0x168   : > { %1976 = vst.msk [vmem:[#allocation3 + $0x38] sm:$0xff] %vm1968_vm10, %v1887_v28 }
 0x169   : > { %1518 = vrot.lane.b32.xlu1 %v3378_v1, %s3046_s17  ;;  %821 = vst.msk [vmem:[#allocation3 + $0x58] sm:$0xff] %vm809_vm4, %v736_v30 }
 0x16a   : > { %1520 = vrot.lane.b32.xlu0 %v3402_v6, %s3046_s17 }
 0x16b   : > { %v1503_v53 = vpop.permute.xlu1 %1502  ;;  %v1505_v29 = vpop.permute.xlu0 %1504 }
 0x16c   : > { %1591 = vst.msk [vmem:[#allocation3 + $0x40] sm:$0xff] %vm1582_vm8, %v1503_v53  ;;  %1592 = vst.msk [vmem:[#allocation3 + $0x48] sm:$0xff] %vm1582_vm8, %v1505_v29 }
 0x16d   : > { %942 = vrot.lane.b32.xlu1 %v3378_v1, %s3043_s14 }
 0x16e   : > { %944 = vrot.lane.b32.xlu0 %v3402_v6, %s3043_s14  ;;  %v1824_v6 = vld [vmem:[#allocation2 + $0xf2] sm:$0xff] }
 0x16f   : > { %v927_v34 = vpop.permute.xlu1 %926  ;;  %v2008_v59 = vld [vmem:[#allocation3 + $0x38] sm:$0xff]  ;;  %v929_v38 = vpop.permute.xlu0 %928 }
 0x170   : > { %1013 = vst.msk [vmem:[#allocation3 + $0x50] sm:$0xff] %vm1002_vm5, %v927_v34  ;;  %2849 = vmatmul.mubr.msk.f32.gmra.mxu0 %vm2037_vm11, %v2008_v59  ;;  %1014 = vst.msk [vmem:[#allocation3 + $0x58] sm:$0xff] %vm1002_vm5, %v929_v38  ;;  %v1637_v34 = vld [vmem:[#allocation2 + $0x139] sm:$0xff] }
 0x171   : > { %1711 = vrot.lane.b32.xlu1 %v1631_v33, %s3047_s18 }
 0x172   : > { %1713 = vrot.lane.b32.xlu0 %v1632_v62, %s3047_s18 }
 0x173   : > { %v1696_v1 = vpop.permute.xlu1 %1695  ;;  %v1698_v35 = vpop.permute.xlu0 %1697 }
 0x174   : > { %1784 = vst.msk [vmem:[#allocation3 + $0x40] sm:$0xff] %vm1775_vm9, %v1696_v1  ;;  %1785 = vst.msk [vmem:[#allocation3 + $0x48] sm:$0xff] %vm1775_vm9, %v1698_v35 }
 0x175   : > { %1135 = vrot.lane.b32.xlu1 %v1631_v33, %s3044_s15 }
 0x176   : > { %1137 = vrot.lane.b32.xlu0 %v1632_v62, %s3044_s15  ;;  %v1638_v62 = vld [vmem:[#allocation2 + $0x141] sm:$0xff] }
 0x177   : > { %v1120_v36 = vpop.permute.xlu1 %1119  ;;  %v1122_v52 = vpop.permute.xlu0 %1121 }
 0x178   : > { %1206 = vst.msk [vmem:[#allocation3 + $0x50] sm:$0xff] %vm1195_vm6, %v1120_v36  ;;  %1207 = vst.msk [vmem:[#allocation3 + $0x58] sm:$0xff] %vm1195_vm6, %v1122_v52  ;;  %v1831_v36 = vld [vmem:[#allocation2 + $0x142] sm:$0xff] }
 0x179   : > { %1904 = vrot.lane.b32.xlu1 %v1824_v6, %s3048_s27 }
 0x17a   : > { %1906 = vrot.lane.b32.xlu0 %v1825_v37, %s3048_s27 }
 0x17b   : > { %v1889_v39 = vpop.permute.xlu1 %1888  ;;  %v1891_v50 = vpop.permute.xlu0 %1890 }
 0x17c   : > { %1977 = vst.msk [vmem:[#allocation3 + $0x40] sm:$0xff] %vm1968_vm10, %v1889_v39  ;;  %1978 = vst.msk [vmem:[#allocation3 + $0x48] sm:$0xff] %vm1968_vm10, %v1891_v50 }
 0x17d   : > { %1328 = vrot.lane.b32.xlu1 %v1824_v6, %s3045_s16 }
 0x17e   : > { %1330 = vrot.lane.b32.xlu0 %v1825_v37, %s3045_s16 }
 0x17f   : > { %v1313_v5 = vpop.permute.xlu1 %1312  ;;  %v1315_v46 = vpop.permute.xlu0 %1314 }
 0x180   : > { %1399 = vst.msk [vmem:[#allocation3 + $0x50] sm:$0xff] %vm1388_vm7, %v1313_v5  ;;  %1400 = vst.msk [vmem:[#allocation3 + $0x58] sm:$0xff] %vm1388_vm7, %v1315_v46  ;;  %v1446_v46 = vld [vmem:[#allocation2 + $0x150] sm:$0xff] }
 0x181   : > { %753 = vrot.lane.b32.xlu1 %v1824_v6, %s3042_s13 }
 0x182   : > { %755 = vrot.lane.b32.xlu0 %v1825_v37, %s3042_s13 }
 0x183   : > { %v738_v32 = vpop.permute.xlu1 %737  ;;  %v2009_v55 = vld [vmem:[#allocation3 + $0x40] sm:$0xff]  ;;  %v740_v49 = vpop.permute.xlu0 %739  ;;  %v2010_v7 = vld [vmem:[#allocation3 + $0x48] sm:$0xff] }
 0x184   : > { %822 = vst.msk [vmem:[#allocation3 + $0x60] sm:$0xff] %vm809_vm4, %v738_v32  ;;  %2851 = vmatprep.mubr.msk.f32.mxu0 %vm2037_vm11, %v2009_v55  ;;  %823 = vst.msk [vmem:[#allocation3 + $0x68] sm:$0xff] %vm809_vm4, %v740_v49  ;;  %v1447_v49 = vld [vmem:[#allocation2 + $0x158] sm:$0xff] }
 0x185   : > { %1522 = vrot.lane.b32.xlu1 %v3394_v4, %s3046_s17  ;;  %2852 = vmatmul.mubr.msk.f32.gmra.mxu0 %vm2037_vm11, %v2010_v7 }
 0x186   : > { %1524 = vrot.lane.b32.xlu0 %v3416_v10, %s3046_s17 }
 0x187   : > { %v1507_v11 = vpop.permute.xlu1 %1506  ;;  %v1509_v12 = vpop.permute.xlu0 %1508 }
 0x188   : > { %1593 = vst.msk [vmem:[#allocation3 + $0x50] sm:$0xff] %vm1582_vm8, %v1507_v11  ;;  %1594 = vst.msk [vmem:[#allocation3 + $0x58] sm:$0xff] %vm1582_vm8, %v1509_v12 }
 0x189   : > { %946 = vrot.lane.b32.xlu1 %v3394_v4, %s3043_s14 }
 0x18a   : > { %948 = vrot.lane.b32.xlu0 %v3416_v10, %s3043_s14  ;;  %v1826_v10 = vld [vmem:[#allocation2 + $0x10a] sm:$0xff] }
 0x18b   : > { %v931_v15 = vpop.permute.xlu1 %930  ;;  %v933_v54 = vpop.permute.xlu0 %932 }
 0x18c   : > { %1015 = vst.msk [vmem:[#allocation3 + $0x60] sm:$0xff] %vm1002_vm5, %v931_v15  ;;  %1016 = vst.msk [vmem:[#allocation3 + $0x68] sm:$0xff] %vm1002_vm5, %v933_v54  ;;  %v1640_v15 = vld [vmem:[#allocation2 + $0x159] sm:$0xff] }
 0x18d   : > { %1715 = vrot.lane.b32.xlu1 %v1633_v13, %s3047_s18 }
 0x18e   : > { %1717 = vrot.lane.b32.xlu0 %v1634_v0, %s3047_s18 }
 0x18f   : > { %v1700_v4 = vpop.permute.xlu1 %1699 }
 0x190   : > { %1786 = vst.msk [vmem:[#allocation3 + $0x50] sm:$0xff] %vm1775_vm9, %v1700_v4  ;;  %v1702_v3 = vpop.permute.xlu0 %1701 }
 0x191   : > { %1139 = vrot.lane.b32.xlu1 %v1633_v13, %s3044_s15  ;;  %1787 = vst.msk [vmem:[#allocation3 + $0x58] sm:$0xff] %vm1775_vm9, %v1702_v3  ;;  %v1639_v13 = vld [vmem:[#allocation2 + $0x151] sm:$0xff] }
 0x192   : > { %1141 = vrot.lane.b32.xlu0 %v1634_v0, %s3044_s15  ;;  %v1832_v3 = vld [vmem:[#allocation2 + $0x152] sm:$0xff] }
 0x193   : > { %v1124_v17 = vpop.permute.xlu1 %1123 }
 0x194   : > { %1208 = vst.msk [vmem:[#allocation3 + $0x60] sm:$0xff] %vm1195_vm6, %v1124_v17  ;;  %v1126_v40 = vpop.permute.xlu0 %1125 }
 0x195   : > { %1908 = vrot.lane.b32.xlu1 %v1826_v10, %s3048_s27  ;;  %1209 = vst.msk [vmem:[#allocation3 + $0x68] sm:$0xff] %vm1195_vm6, %v1126_v40 }
 0x196   : > { %1910 = vrot.lane.b32.xlu0 %v1827_v25, %s3048_s27 }
 0x197   : > { %v1893_v58 = vpop.permute.xlu1 %1892 }
 0x198   : > { %1979 = vst.msk [vmem:[#allocation3 + $0x50] sm:$0xff] %vm1968_vm10, %v1893_v58  ;;  %v1895_v9 = vpop.permute.xlu0 %1894 }
 0x199   : > { %1332 = vrot.lane.b32.xlu1 %v1826_v10, %s3045_s16  ;;  %1980 = vst.msk [vmem:[#allocation3 + $0x58] sm:$0xff] %vm1968_vm10, %v1895_v9 }
 0x19a   : > { %1334 = vrot.lane.b32.xlu0 %v1827_v25, %s3045_s16 }
 0x19b   : > { %v1317_v27 = vpop.permute.xlu1 %1316 }
 0x19c   : > { %1401 = vst.msk [vmem:[#allocation3 + $0x60] sm:$0xff] %vm1388_vm7, %v1317_v27  ;;  %v1319_v26 = vpop.permute.xlu0 %1318 }
 0x19d   : > { %757 = vrot.lane.b32.xlu1 %v1826_v10, %s3042_s13  ;;  %1402 = vst.msk [vmem:[#allocation3 + $0x68] sm:$0xff] %vm1388_vm7, %v1319_v26 }
 0x19e   : > { %759 = vrot.lane.b32.xlu0 %v1827_v25, %s3042_s13  ;;  %v1833_v25 = vld [vmem:[#allocation2 + $0x15a] sm:$0xff] }
 0x19f   : > { %v742_v42 = vpop.permute.xlu1 %741  ;;  %v2011_v16 = vld [vmem:[#allocation3 + $0x50] sm:$0xff] }
 0x1a0   : > { %824 = vst.msk [vmem:[#allocation3 + $0x70] sm:$0xff] %vm809_vm4, %v742_v42  ;;  %2854 = vmatprep.mubr.msk.f32.mxu0 %vm2037_vm11, %v2011_v16  ;;  %v744_v43 = vpop.permute.xlu0 %743  ;;  %v2012_v48 = vld [vmem:[#allocation3 + $0x58] sm:$0xff] }
 0x1a1   : > { %1526 = vrot.lane.b32.xlu1 %v3408_v8, %s3046_s17  ;;  %825 = vst.msk [vmem:[#allocation3 + $0x78] sm:$0xff] %vm809_vm4, %v744_v43  ;;  %2855 = vmatmul.mubr.msk.f32.gmra.mxu0 %vm2037_vm11, %v2012_v48  ;;  %v1448_v16 = vld [vmem:[#allocation2 + $0x168] sm:$0xff] }
 0x1a2   : > { %1528 = vrot.lane.b32.xlu0 %v3424_v14, %s3046_s17 }
 0x1a3   : > { %v1511_v44 = vpop.permute.xlu1 %1510 }
 0x1a4   : > { %1595 = vst.msk [vmem:[#allocation3 + $0x60] sm:$0xff] %vm1582_vm8, %v1511_v44  ;;  %v1513_v45 = vpop.permute.xlu0 %1512  ;;  %v1449_v44 = vld [vmem:[#allocation2 + $0x170] sm:$0xff] }
 0x1a5   : > { %950 = vrot.lane.b32.xlu1 %v3408_v8, %s3043_s14  ;;  %1596 = vst.msk [vmem:[#allocation3 + $0x68] sm:$0xff] %vm1582_vm8, %v1513_v45 }
 0x1a6   : > { %952 = vrot.lane.b32.xlu0 %v3424_v14, %s3043_s14  ;;  %v1828_v14 = vld [vmem:[#allocation2 + $0x122] sm:$0xff] }
 0x1a7   : > { %v935_v20 = vpop.permute.xlu1 %934 }
 0x1a8   : > { %1017 = vst.msk [vmem:[#allocation3 + $0x70] sm:$0xff] %vm1002_vm5, %v935_v20  ;;  %v937_v60 = vpop.permute.xlu0 %936 }
 0x1a9   : > { %1719 = vrot.lane.b32.xlu1 %v1635_v19, %s3047_s18  ;;  %1018 = vst.msk [vmem:[#allocation3 + $0x78] sm:$0xff] %vm1002_vm5, %v937_v60  ;;  %v1641_v60 = vld [vmem:[#allocation2 + $0x169] sm:$0xff] }
 0x1aa   : > { %1721 = vrot.lane.b32.xlu0 %v1636_v57, %s3047_s18 }
 0x1ab   : > { %v1704_v63 = vpop.permute.xlu1 %1703 }
 0x1ac   : > { %1788 = vst.msk [vmem:[#allocation3 + $0x60] sm:$0xff] %vm1775_vm9, %v1704_v63  ;;  %v1706_v8 = vpop.permute.xlu0 %1705 }
 0x1ad   : > { %1143 = vrot.lane.b32.xlu1 %v1635_v19, %s3044_s15  ;;  %1789 = vst.msk [vmem:[#allocation3 + $0x68] sm:$0xff] %vm1775_vm9, %v1706_v8  ;;  %v1642_v8 = vld [vmem:[#allocation2 + $0x171] sm:$0xff] }
 0x1ae   : > { %1145 = vrot.lane.b32.xlu0 %v1636_v57, %s3044_s15 }
 0x1af   : > { %v1128_v2 = vpop.permute.xlu1 %1127 }
 0x1b0   : > { %1210 = vst.msk [vmem:[#allocation3 + $0x70] sm:$0xff] %vm1195_vm6, %v1128_v2  ;;  %v1130_v21 = vpop.permute.xlu0 %1129 }
 0x1b1   : > { %1912 = vrot.lane.b32.xlu1 %v1828_v14, %s3048_s27  ;;  %1211 = vst.msk [vmem:[#allocation3 + $0x78] sm:$0xff] %vm1195_vm6, %v1130_v21 }
 0x1b2   : > { %1914 = vrot.lane.b32.xlu0 %v1829_v31, %s3048_s27 }
 0x1b3   : > { %v1897_v22 = vpop.permute.xlu1 %1896 }
 0x1b4   : > { %1981 = vst.msk [vmem:[#allocation3 + $0x60] sm:$0xff] %vm1968_vm10, %v1897_v22  ;;  %v1899_v23 = vpop.permute.xlu0 %1898 }
 0x1b5   : > { %1336 = vrot.lane.b32.xlu1 %v1828_v14, %s3045_s16  ;;  %1982 = vst.msk [vmem:[#allocation3 + $0x68] sm:$0xff] %vm1968_vm10, %v1899_v23  ;;  %v1834_v23 = vld [vmem:[#allocation2 + $0x16a] sm:$0xff] }
 0x1b6   : > { %1338 = vrot.lane.b32.xlu0 %v1829_v31, %s3045_s16 }
 0x1b7   : > { %v1321_v47 = vpop.permute.xlu1 %1320 }
 0x1b8   : > { %1403 = vst.msk [vmem:[#allocation3 + $0x70] sm:$0xff] %vm1388_vm7, %v1321_v47  ;;  %v1323_v56 = vpop.permute.xlu0 %1322 }
 0x1b9   : > { %761 = vrot.lane.b32.xlu1 %v1828_v14, %s3042_s13  ;;  %1404 = vst.msk [vmem:[#allocation3 + $0x78] sm:$0xff] %vm1388_vm7, %v1323_v56  ;;  %v1835_v56 = vld [vmem:[#allocation2 + $0x172] sm:$0xff] }
 0x1ba   : > { %763 = vrot.lane.b32.xlu0 %v1829_v31, %s3042_s13 }
 0x1bb   : > { %v746_v24 = vpop.permute.xlu1 %745  ;;  %v2013_v28 = vld [vmem:[#allocation3 + $0x60] sm:$0xff] }
 0x1bc   : > { %826 = vst.msk [vmem:[#allocation3 + $0x80] sm:$0xff] %vm809_vm4, %v746_v24  ;;  %2857 = vmatprep.mubr.msk.f32.mxu0 %vm2037_vm11, %v2013_v28  ;;  %v748_v30 = vpop.permute.xlu0 %747  ;;  %v2014_v53 = vld [vmem:[#allocation3 + $0x68] sm:$0xff] }
 0x1bd   : > { %1530 = vrot.lane.b32.xlu1 %v1444_v51, %s3046_s17  ;;  %827 = vst.msk [vmem:[#allocation3 + $0x88] sm:$0xff] %vm809_vm4, %v748_v30  ;;  %2858 = vmatmul.mubr.msk.f32.gmra.mxu0 %vm2037_vm11, %v2014_v53 }
 0x1be   : > { %1532 = vrot.lane.b32.xlu0 %v3431_v18, %s3046_s17 }
 0x1bf   : > { %v1515_v29 = vpop.permute.xlu1 %1514 }
 0x1c0   : > { %1597 = vst.msk [vmem:[#allocation3 + $0x70] sm:$0xff] %vm1582_vm8, %v1515_v29  ;;  %v1517_v33 = vpop.permute.xlu0 %1516  ;;  %v1450_v29 = vld [vmem:[#allocation2 + $0x180] sm:$0xff] }
 0x1c1   : > { %954 = vrot.lane.b32.xlu1 %v1444_v51, %s3043_s14  ;;  %1598 = vst.msk [vmem:[#allocation3 + $0x78] sm:$0xff] %vm1582_vm8, %v1517_v33 }
 0x1c2   : > { %956 = vrot.lane.b32.xlu0 %v3431_v18, %s3043_s14  ;;  %v1830_v18 = vld [vmem:[#allocation2 + $0x13a] sm:$0xff] }
 0x1c3   : > { %v939_v59 = vpop.permute.xlu1 %938 }
 0x1c4   : > { %1019 = vst.msk [vmem:[#allocation3 + $0x80] sm:$0xff] %vm1002_vm5, %v939_v59  ;;  %v941_v38 = vpop.permute.xlu0 %940  ;;  %v1451_v59 = vld [vmem:[#allocation2 + $0x188] sm:$0xff] }
 0x1c5   : > { %1723 = vrot.lane.b32.xlu1 %v1637_v34, %s3047_s18  ;;  %1020 = vst.msk [vmem:[#allocation3 + $0x88] sm:$0xff] %vm1002_vm5, %v941_v38 }
 0x1c6   : > { %1725 = vrot.lane.b32.xlu0 %v1638_v62, %s3047_s18 }
 0x1c7   : > { %v1708_v1 = vpop.permute.xlu1 %1707 }
 0x1c8   : > { %1790 = vst.msk [vmem:[#allocation3 + $0x70] sm:$0xff] %vm1775_vm9, %v1708_v1  ;;  %v1710_v35 = vpop.permute.xlu0 %1709 }
 0x1c9   : > { %1147 = vrot.lane.b32.xlu1 %v1637_v34, %s3044_s15  ;;  %1791 = vst.msk [vmem:[#allocation3 + $0x78] sm:$0xff] %vm1775_vm9, %v1710_v35 }
 0x1ca   : > { %1149 = vrot.lane.b32.xlu0 %v1638_v62, %s3044_s15 }
 0x1cb   : > { %v1132_v6 = vpop.permute.xlu1 %1131 }
 0x1cc   : > { %1212 = vst.msk [vmem:[#allocation3 + $0x80] sm:$0xff] %vm1195_vm6, %v1132_v6  ;;  %v1134_v37 = vpop.permute.xlu0 %1133 }
 0x1cd   : > { %1916 = vrot.lane.b32.xlu1 %v1830_v18, %s3048_s27  ;;  %1213 = vst.msk [vmem:[#allocation3 + $0x88] sm:$0xff] %vm1195_vm6, %v1134_v37  ;;  %v1644_v37 = vld [vmem:[#allocation2 + $0x189] sm:$0xff] }
 0x1ce   : > { %1918 = vrot.lane.b32.xlu0 %v1831_v36, %s3048_s27 }
 0x1cf   : > { %v1901_v52 = vpop.permute.xlu1 %1900 }
 0x1d0   : > { %1983 = vst.msk [vmem:[#allocation3 + $0x70] sm:$0xff] %vm1968_vm10, %v1901_v52  ;;  %v1903_v39 = vpop.permute.xlu0 %1902 }
 0x1d1   : > { %1340 = vrot.lane.b32.xlu1 %v1830_v18, %s3045_s16  ;;  %1984 = vst.msk [vmem:[#allocation3 + $0x78] sm:$0xff] %vm1968_vm10, %v1903_v39 }
 0x1d2   : > { %1342 = vrot.lane.b32.xlu0 %v1831_v36, %s3045_s16 }
 0x1d3   : > { %v1325_v50 = vpop.permute.xlu1 %1324 }
 0x1d4   : > { %1405 = vst.msk [vmem:[#allocation3 + $0x80] sm:$0xff] %vm1388_vm7, %v1325_v50  ;;  %v1327_v5 = vpop.permute.xlu0 %1326 }
 0x1d5   : > { %765 = vrot.lane.b32.xlu1 %v1830_v18, %s3042_s13  ;;  %1406 = vst.msk [vmem:[#allocation3 + $0x88] sm:$0xff] %vm1388_vm7, %v1327_v5  ;;  %v1643_v18 = vld [vmem:[#allocation2 + $0x181] sm:$0xff] }
 0x1d6   : > { %767 = vrot.lane.b32.xlu0 %v1831_v36, %s3042_s13 }
 0x1d7   : > { %v750_v32 = vpop.permute.xlu1 %749  ;;  %v2015_v55 = vld [vmem:[#allocation3 + $0x70] sm:$0xff] }
 0x1d8   : > { %828 = vst.msk [vmem:[#allocation3 + $0x90] sm:$0xff] %vm809_vm4, %v750_v32  ;;  %2860 = vmatprep.mubr.msk.f32.mxu0 %vm2037_vm11, %v2015_v55  ;;  %v752_v7 = vpop.permute.xlu0 %751  ;;  %v2016_v11 = vld [vmem:[#allocation3 + $0x78] sm:$0xff] }
 0x1d9   : > { %1534 = vrot.lane.b32.xlu1 %v1446_v46, %s3046_s17  ;;  %829 = vst.msk [vmem:[#allocation3 + $0x98] sm:$0xff] %vm809_vm4, %v752_v7  ;;  %2861 = vmatmul.mubr.msk.f32.gmra.mxu0 %vm2037_vm11, %v2016_v11  ;;  %v1837_v55 = vld [vmem:[#allocation2 + $0x18a] sm:$0xff]  ;;  %v1452_v11 = vld [vmem:[#allocation2 + $0x198] sm:$0xff] }
 0x1da   : > { %1536 = vrot.lane.b32.xlu0 %v1447_v49, %s3046_s17 }
 0x1db   : > { %v1519_v41 = vpop.permute.xlu1 %1518 }
 0x1dc   : > { %1599 = vst.msk [vmem:[#allocation3 + $0x80] sm:$0xff] %vm1582_vm8, %v1519_v41  ;;  %v1521_v12 = vpop.permute.xlu0 %1520 }
 0x1dd   : > { %958 = vrot.lane.b32.xlu1 %v1446_v46, %s3043_s14  ;;  %1600 = vst.msk [vmem:[#allocation3 + $0x88] sm:$0xff] %vm1582_vm8, %v1521_v12  ;;  %v1836_v46 = vld [vmem:[#allocation2 + $0x182] sm:$0xff] }
 0x1de   : > { %960 = vrot.lane.b32.xlu0 %v1447_v49, %s3043_s14 }
 0x1df   : > { %v943_v61 = vpop.permute.xlu1 %942 }
 0x1e0   : > { %1021 = vst.msk [vmem:[#allocation3 + $0x90] sm:$0xff] %vm1002_vm5, %v943_v61  ;;  %v945_v0 = vpop.permute.xlu0 %944 }
 0x1e1   : > { %1727 = vrot.lane.b32.xlu1 %v1639_v13, %s3047_s18  ;;  %1022 = vst.msk [vmem:[#allocation3 + $0x98] sm:$0xff] %vm1002_vm5, %v945_v0 }
 0x1e2   : > { %1729 = vrot.lane.b32.xlu0 %v1640_v15, %s3047_s18 }
 0x1e3   : > { %v1712_v54 = vpop.permute.xlu1 %1711 }
 0x1e4   : > { %1792 = vst.msk [vmem:[#allocation3 + $0x80] sm:$0xff] %vm1775_vm9, %v1712_v54  ;;  %v1714_v4 = vpop.permute.xlu0 %1713 }
 0x1e5   : > { %1151 = vrot.lane.b32.xlu1 %v1639_v13, %s3044_s15  ;;  %1793 = vst.msk [vmem:[#allocation3 + $0x88] sm:$0xff] %vm1775_vm9, %v1714_v4  ;;  %v1645_v13 = vld [vmem:[#allocation2 + $0x199] sm:$0xff] }
 0x1e6   : > { %1153 = vrot.lane.b32.xlu0 %v1640_v15, %s3044_s15  ;;  %v1453_v15 = vld [vmem:[#allocation2 + $0x1a0] sm:$0xff] }
 0x1e7   : > { %v1136_v10 = vpop.permute.xlu1 %1135  ;;  %v1838_v4 = vld [vmem:[#allocation2 + $0x19a] sm:$0xff] }
 0x1e8   : > { %1214 = vst.msk [vmem:[#allocation3 + $0x90] sm:$0xff] %vm1195_vm6, %v1136_v10  ;;  %v3937_v17 = vpop.f32.mrf.mxu0  ;;  %v1138_v40 = vpop.permute.xlu0 %1137 }
 0x1e9   : > { %2571 = vst.msk [vmem:[%s3933_s24 + $0x8] sm:$0xff] %vm2363_vm12, %v3937_v17  ;;  %1920 = vrot.lane.b32.xlu1 %v1832_v3, %s3048_s27 }
 0x1ea   : > { %1215 = vst.msk [vmem:[#allocation3 + $0x98] sm:$0xff] %vm1195_vm6, %v1138_v40  ;;  %v3944_v58 = vpop.f32.mrf.mxu0  ;;  %1922 = vrot.lane.b32.xlu0 %v1833_v25, %s3048_s27 }
 0x1eb   : > { %2570 = vst.msk [vmem:[%s3933_s24] sm:$0xff] %vm2363_vm12, %v3944_v58  ;;  %v1905_v9 = vpop.permute.xlu1 %1904 }
 0x1ec   : > { %1985 = vst.msk [vmem:[#allocation3 + $0x80] sm:$0xff] %vm1968_vm10, %v1905_v9  ;;  %v1907_v27 = vpop.permute.xlu0 %1906 }
 0x1ed   : > { %1344 = vrot.lane.b32.xlu1 %v1832_v3, %s3045_s16  ;;  %1986 = vst.msk [vmem:[#allocation3 + $0x88] sm:$0xff] %vm1968_vm10, %v1907_v27 }
 0x1ee   : > { %1346 = vrot.lane.b32.xlu0 %v1833_v25, %s3045_s16 }
 0x1ef   : > { %v1329_v26 = vpop.permute.xlu1 %1328 }
 0x1f0   : > { %1407 = vst.msk [vmem:[#allocation3 + $0x90] sm:$0xff] %vm1388_vm7, %v1329_v26  ;;  %v1331_v42 = vpop.permute.xlu0 %1330 }
 0x1f1   : > { %769 = vrot.lane.b32.xlu1 %v1832_v3, %s3042_s13  ;;  %1408 = vst.msk [vmem:[#allocation3 + $0x98] sm:$0xff] %vm1388_vm7, %v1331_v42  ;;  %v1839_v42 = vld [vmem:[#allocation2 + $0x1a2] sm:$0xff] }
 0x1f2   : > { %771 = vrot.lane.b32.xlu0 %v1833_v25, %s3042_s13  ;;  %v1646_v25 = vld [vmem:[#allocation2 + $0x1a1] sm:$0xff] }
 0x1f3   : > { %v754_v43 = vpop.permute.xlu1 %753  ;;  %v2017_v48 = vld [vmem:[#allocation3 + $0x80] sm:$0xff] }
 0x1f4   : > { %830 = vst.msk [vmem:[#allocation3 + $0xa0] sm:$0xff] %vm809_vm4, %v754_v43  ;;  %2863 = vmatprep.mubr.msk.f32.mxu1 %vm2037_vm11, %v2017_v48  ;;  %v756_v45 = vpop.permute.xlu0 %755  ;;  %v2018_v19 = vld [vmem:[#allocation3 + $0x88] sm:$0xff] }
 0x1f5   : > { %1538 = vrot.lane.b32.xlu1 %v1448_v16, %s3046_s17  ;;  %831 = vst.msk [vmem:[#allocation3 + $0xa8] sm:$0xff] %vm809_vm4, %v756_v45  ;;  %2864 = vmatmul.mubr.msk.f32.vlgmr.msra.gmra.mxu1 %vm2037_vm11, %v2018_v19 }
 0x1f6   : > { %1540 = vrot.lane.b32.xlu0 %v1449_v44, %s3046_s17 }
 0x1f7   : > { %v1523_v20 = vpop.permute.xlu1 %1522 }
 0x1f8   : > { %1601 = vst.msk [vmem:[#allocation3 + $0x90] sm:$0xff] %vm1582_vm8, %v1523_v20  ;;  %v1525_v57 = vpop.permute.xlu0 %1524 }
 0x1f9   : > { %962 = vrot.lane.b32.xlu1 %v1448_v16, %s3043_s14  ;;  %1602 = vst.msk [vmem:[#allocation3 + $0x98] sm:$0xff] %vm1582_vm8, %v1525_v57 }
 0x1fa   : > { %964 = vrot.lane.b32.xlu0 %v1449_v44, %s3043_s14 }
 0x1fb   : > { %v947_v63 = vpop.permute.xlu1 %946 }
 0x1fc   : > { %1023 = vst.msk [vmem:[#allocation3 + $0xa0] sm:$0xff] %vm1002_vm5, %v947_v63  ;;  %v949_v14 = vpop.permute.xlu0 %948 }
 0x1fd   : > { %1731 = vrot.lane.b32.xlu1 %v1641_v60, %s3047_s18  ;;  %1024 = vst.msk [vmem:[#allocation3 + $0xa8] sm:$0xff] %vm1002_vm5, %v949_v14 }
 0x1fe   : > { %1733 = vrot.lane.b32.xlu0 %v1642_v8, %s3047_s18 }
 0x1ff   : > { %v1716_v2 = vpop.permute.xlu1 %1715 }
 0x200   : > { %1794 = vst.msk [vmem:[#allocation3 + $0x90] sm:$0xff] %vm1775_vm9, %v1716_v2  ;;  %v3973_v31 = vpop.f32.mrf.mxu0  ;;  %v1718_v21 = vpop.permute.xlu0 %1717 }
 0x201   : > { %2573 = vst.msk [vmem:[%s3933_s24 + $0x18] sm:$0xff] %vm2363_vm12, %v3973_v31  ;;  %1155 = vrot.lane.b32.xlu1 %v1641_v60, %s3044_s15 }
 0x202   : > { %1795 = vst.msk [vmem:[#allocation3 + $0x98] sm:$0xff] %vm1775_vm9, %v1718_v21  ;;  %v3980_v22 = vpop.f32.mrf.mxu0  ;;  %1157 = vrot.lane.b32.xlu0 %v1642_v8, %s3044_s15 }
 0x203   : > { %2572 = vst.msk [vmem:[%s3933_s24 + $0x10] sm:$0xff] %vm2363_vm12, %v3980_v22  ;;  %v1140_v47 = vpop.permute.xlu1 %1139 }
 0x204   : > { %1216 = vst.msk [vmem:[#allocation3 + $0xa0] sm:$0xff] %vm1195_vm6, %v1140_v47  ;;  %v1142_v51 = vpop.permute.xlu0 %1141 }
 0x205   : > { %1924 = vrot.lane.b32.xlu1 %v1834_v23, %s3048_s27  ;;  %1217 = vst.msk [vmem:[#allocation3 + $0xa8] sm:$0xff] %vm1195_vm6, %v1142_v51 }
 0x206   : > { %1926 = vrot.lane.b32.xlu0 %v1835_v56, %s3048_s27 }
 0x207   : > { %v1909_v24 = vpop.permute.xlu1 %1908 }
 0x208   : > { %1987 = vst.msk [vmem:[#allocation3 + $0x90] sm:$0xff] %vm1968_vm10, %v1909_v24  ;;  %v1911_v28 = vpop.permute.xlu0 %1910 }
 0x209   : > { %1348 = vrot.lane.b32.xlu1 %v1834_v23, %s3045_s16  ;;  %1988 = vst.msk [vmem:[#allocation3 + $0x98] sm:$0xff] %vm1968_vm10, %v1911_v28 }
 0x20a   : > { %1350 = vrot.lane.b32.xlu0 %v1835_v56, %s3045_s16 }
 0x20b   : > { %v1333_v30 = vpop.permute.xlu1 %1332 }
 0x20c   : > { %1409 = vst.msk [vmem:[#allocation3 + $0xa0] sm:$0xff] %vm1388_vm7, %v1333_v30  ;;  %v1335_v53 = vpop.permute.xlu0 %1334 }
 0x20d   : > { %773 = vrot.lane.b32.xlu1 %v1834_v23, %s3042_s13  ;;  %1410 = vst.msk [vmem:[#allocation3 + $0xa8] sm:$0xff] %vm1388_vm7, %v1335_v53 }
 0x20e   : > { %775 = vrot.lane.b32.xlu0 %v1835_v56, %s3042_s13  ;;  %s254_s13 = scalar_lea.vmem [#allocation4], %s4299_s7 }
 0x20f   : > { %v758_v33 = vpop.permute.xlu1 %757  ;;  %v2019_v34 = vld [vmem:[#allocation3 + $0x90] sm:$0xff] }
 0x210   : > { %832 = vst.msk [vmem:[#allocation3 + $0xb0] sm:$0xff] %vm809_vm4, %v758_v33  ;;  %2866 = vmatprep.mubr.msk.f32.mxu1 %vm2037_vm11, %v2019_v34  ;;  %v760_v62 = vpop.permute.xlu0 %759  ;;  %v2020_v38 = vld [vmem:[#allocation3 + $0x98] sm:$0xff] }
 0x211   : > { %1542 = vrot.lane.b32.xlu1 %v1450_v29, %s3046_s17  ;;  %833 = vst.msk [vmem:[#allocation3 + $0xb8] sm:$0xff] %vm809_vm4, %v760_v62  ;;  %2867 = vmatmul.mubr.msk.f32.gmra.mxu1 %vm2037_vm11, %v2020_v38 }
 0x212   : > { %1544 = vrot.lane.b32.xlu0 %v1451_v59, %s3046_s17 }
 0x213   : > { %v1527_v1 = vpop.permute.xlu1 %1526 }
 0x214   : > { %1603 = vst.msk [vmem:[#allocation3 + $0xa0] sm:$0xff] %vm1582_vm8, %v1527_v1  ;;  %v1529_v35 = vpop.permute.xlu0 %1528 }
 0x215   : > { %966 = vrot.lane.b32.xlu1 %v1450_v29, %s3043_s14  ;;  %1604 = vst.msk [vmem:[#allocation3 + $0xa8] sm:$0xff] %vm1582_vm8, %v1529_v35 }
 0x216   : > { %968 = vrot.lane.b32.xlu0 %v1451_v59, %s3043_s14  ;;  %s2627_s14 = sshll.u32 %s254_s13, 4  ;;  %s2628_s14 = int_to_ptr.vmem [resolvable:$true] %s2627_s14 }
 0x217   : > { %v951_v6 = vpop.permute.xlu1 %950  ;;  %s2948_s26 = scalar_lea.vmem %s2628_s14, 16 }
 0x218   : > { %1025 = vst.msk [vmem:[#allocation3 + $0xb0] sm:$0xff] %vm1002_vm5, %v951_v6  ;;  %v4009_v36 = vpop.f32.mrf.mxu0  ;;  %v953_v52 = vpop.permute.xlu0 %952  ;;  %p2949_p11 = scmp.ne.s32.totalorder %s2628_s14, %s2948_s26 }
 0x219   : > { %2575 = vst.msk [vmem:[%s3933_s24 + $0x28] sm:$0xff] %vm2363_vm12, %v4009_v36  ;;  %1735 = vrot.lane.b32.xlu1 %v1643_v18, %s3047_s18 }
 0x21a   : > { %1026 = vst.msk [vmem:[#allocation3 + $0xb8] sm:$0xff] %vm1002_vm5, %v953_v52  ;;  %v4016_v39 = vpop.f32.mrf.mxu0  ;;  %1737 = vrot.lane.b32.xlu0 %v1644_v37, %s3047_s18  ;;  %p2950_p12 = pnand %p2949_p11, %p3124_p5 }
 0x21b   : > { %2574 = vst.msk [vmem:[%s3933_s24 + $0x20] sm:$0xff] %vm2363_vm12, %v4016_v39  ;;  %v1720_v50 = vpop.permute.xlu1 %1719 }
 0x21c   : > { %1796 = vst.msk [vmem:[#allocation3 + $0xa0] sm:$0xff] %vm1775_vm9, %v1720_v50  ;;  %v1722_v5 = vpop.permute.xlu0 %1721  ;;  %p2951_p13 = pneg %p2950_p12 }
 0x21d   : > { %1159 = vrot.lane.b32.xlu1 %v1643_v18, %s3044_s15  ;;  %1797 = vst.msk [vmem:[#allocation3 + $0xa8] sm:$0xff] %vm1775_vm9, %v1722_v5 }
 0x21e   : > { %1161 = vrot.lane.b32.xlu0 %v1644_v37, %s3044_s15 }
 0x21f   : > { %v1144_v32 = vpop.permute.xlu1 %1143 }
 0x220   : > { %1218 = vst.msk [vmem:[#allocation3 + $0xb0] sm:$0xff] %vm1195_vm6, %v1144_v32  ;;  %v1146_v49 = vpop.permute.xlu0 %1145 }
 0x221   : > { %1928 = vrot.lane.b32.xlu1 %v1836_v46, %s3048_s27  ;;  %1219 = vst.msk [vmem:[#allocation3 + $0xb8] sm:$0xff] %vm1195_vm6, %v1146_v49 }
 0x222   : > { %1930 = vrot.lane.b32.xlu0 %v1837_v55, %s3048_s27 }
 0x223   : > { %v1913_v7 = vpop.permute.xlu1 %1912 }
 0x224   : > { %1989 = vst.msk [vmem:[#allocation3 + $0xa0] sm:$0xff] %vm1968_vm10, %v1913_v7  ;;  %v1915_v41 = vpop.permute.xlu0 %1914 }
 0x225   : > { %1352 = vrot.lane.b32.xlu1 %v1836_v46, %s3045_s16  ;;  %1990 = vst.msk [vmem:[#allocation3 + $0xa8] sm:$0xff] %vm1968_vm10, %v1915_v41 }
 0x226   : > { %1546 = vrot.lane.b32.xlu0 %v1452_v11, %s3046_s17 }
 0x227   : > { %v1337_v12 = vpop.permute.xlu1 %1336 }
 0x228   : > { %1411 = vst.msk [vmem:[#allocation3 + $0xb0] sm:$0xff] %vm1388_vm7, %v1337_v12  ;;  %v1339_v61 = vpop.permute.xlu0 %1338 }
 0x229   : > { %1354 = vrot.lane.b32.xlu1 %v1837_v55, %s3045_s16  ;;  %1412 = vst.msk [vmem:[#allocation3 + $0xb8] sm:$0xff] %vm1388_vm7, %v1339_v61 }
 0x22a   : > { %1739 = vrot.lane.b32.xlu0 %v1645_v13, %s3047_s18 }
 0x22b   : > { %v762_v0 = vpop.permute.xlu1 %761  ;;  %v2021_v54 = vld [vmem:[#allocation3 + $0xa0] sm:$0xff] }
 0x22c   : > { %834 = vst.msk [vmem:[#allocation3 + $0xc0] sm:$0xff] %vm809_vm4, %v762_v0  ;;  %2869 = vmatprep.mubr.msk.f32.mxu1 %vm2037_vm11, %v2021_v54  ;;  %v764_v3 = vpop.permute.xlu0 %763  ;;  %v2022_v10 = vld [vmem:[#allocation3 + $0xa8] sm:$0xff] }
 0x22d   : > { %1548 = vrot.lane.b32.xlu1 %v1453_v15, %s3046_s17  ;;  %835 = vst.msk [vmem:[#allocation3 + $0xc8] sm:$0xff] %vm809_vm4, %v764_v3  ;;  %2870 = vmatmul.mubr.msk.f32.gmra.mxu1 %vm2037_vm11, %v2022_v10  ;;  %s2625_s17 = scalar_lea.hbm %s4476_s5, %s2789_s8 }
 0x22e   : > { %1932 = vrot.lane.b32.xlu0 %v1838_v4, %s3048_s27 }
 0x22f   : > { %v1531_v40 = vpop.permute.xlu1 %1530 }
 0x230   : > { %1605 = vst.msk [vmem:[#allocation3 + $0xb0] sm:$0xff] %vm1582_vm8, %v1531_v40  ;;  %v4045_v9 = vpop.f32.mrf.mxu0  ;;  %v1533_v27 = vpop.permute.xlu0 %1532 }
 0x231   : > { %2577 = vst.msk [vmem:[%s3933_s24 + $0x38] sm:$0xff] %vm2363_vm12, %v4045_v9  ;;  %1741 = vrot.lane.b32.xlu1 %v1646_v25, %s3047_s18  ;;  %s2608_s18 = scalar_lea.sflag [#allocation5], %s4299_s7 }
 0x232   : > { %1606 = vst.msk [vmem:[#allocation3 + $0xb8] sm:$0xff] %vm1582_vm8, %v1533_v27  ;;  %v4052_v26 = vpop.f32.mrf.mxu0 }
 0x233   : > { %2576 = vst.msk [vmem:[%s3933_s24 + $0x30] sm:$0xff] %vm2363_vm12, %v4052_v26  ;;  %v955_v16 = vpop.permute.xlu1 %954 }
 0x234   : > { %1027 = vst.msk [vmem:[#allocation3 + $0xc0] sm:$0xff] %vm1002_vm5, %v955_v16  ;;  %v957_v43 = vpop.permute.xlu0 %956 }
 0x235   : > { %1934 = vrot.lane.b32.xlu1 %v1839_v42, %s3048_s27  ;;  %1028 = vst.msk [vmem:[#allocation3 + $0xc8] sm:$0xff] %vm1002_vm5, %v957_v43  ;;  %s3049_s27 = smov [#allocation4]  }
 0x236   : > { %s2952_s9 = sshll.u32 %s3049_s27, 4  ;;  %s2953_s9 = int_to_ptr.vmem [resolvable:$false] %s2952_s9 }
 0x237   : > { %v1724_v48 = vpop.permute.xlu1 %1723  ;;  %s2954_s10 = scalar_lea.vmem %s2953_s9, 32  ;;  %p2955_p0 = scmp.lt.s32.totalorder %s2628_s14, %s2953_s9 }
 0x238   : > { %1798 = vst.msk [vmem:[#allocation3 + $0xb0] sm:$0xff] %vm1775_vm9, %v1724_v48  ;;  %v1726_v44 = vpop.permute.xlu0 %1725  ;;  %p2956_p1 = scmp.lt.s32.totalorder %s2954_s10, %s2948_s26 }
 0x239   : > { %1799 = vst.msk [vmem:[#allocation3 + $0xb8] sm:$0xff] %vm1775_vm9, %v1726_v44 }
 0x23a   : > { %p2957_p2 = por %p2956_p1, %p2955_p0 }
 0x23b   : > { %v1148_v45 = vpop.permute.xlu1 %1147 }
 0x23c   : > { %1220 = vst.msk [vmem:[#allocation3 + $0xc0] sm:$0xff] %vm1195_vm6, %v1148_v45  ;;  %v1150_v19 = vpop.permute.xlu0 %1149  ;;  %p2958_p3 = pnand %p2957_p2, %p2951_p13 }
 0x23d   : > { %1221 = vst.msk [vmem:[#allocation3 + $0xc8] sm:$0xff] %vm1195_vm6, %v1150_v19 }
 0x23f   : > { %v1917_v20 = vpop.permute.xlu1 %1916 }
 0x240   : > { %1991 = vst.msk [vmem:[#allocation3 + $0xb0] sm:$0xff] %vm1968_vm10, %v1917_v20  ;;  %v1919_v57 = vpop.permute.xlu0 %1918 }
 0x241   : > { %1992 = vst.msk [vmem:[#allocation3 + $0xb8] sm:$0xff] %vm1968_vm10, %v1919_v57 }
 0x243   : > { %v1341_v60 = vpop.permute.xlu1 %1340 }
 0x244   : > { %1413 = vst.msk [vmem:[#allocation3 + $0xc0] sm:$0xff] %vm1388_vm7, %v1341_v60  ;;  %v1343_v63 = vpop.permute.xlu0 %1342 }
 0x245   : > { %1414 = vst.msk [vmem:[#allocation3 + $0xc8] sm:$0xff] %vm1388_vm7, %v1343_v63  ;;  %v4068_v8 = vpop.f32.mrf.mxu0 }
 0x246   : > { %2579 = vst.msk [vmem:[%s3933_s24 + $0x48] sm:$0xff] %vm2363_vm12, %v4068_v8 }
 0x247   : > { %v766_v14 = vpop.permute.xlu1 %765  ;;  %v2023_v2 = vld [vmem:[#allocation3 + $0xb0] sm:$0xff]  ;;  %v4074_v21 = vpop.f32.mrf.mxu0 }
 0x248   : > { %836 = vst.msk [vmem:[#allocation3 + $0xd0] sm:$0xff] %vm809_vm4, %v766_v14  ;;  %2872 = vmatprep.mubr.msk.f32.mxu1 %vm2037_vm11, %v2023_v2  ;;  %v768_v23 = vpop.permute.xlu0 %767  ;;  %v2024_v47 = vld [vmem:[#allocation3 + $0xb8] sm:$0xff] }
 0x249   : > { %2578 = vst.msk [vmem:[%s3933_s24 + $0x40] sm:$0xff] %vm2363_vm12, %v4074_v21  ;;  %2873 = vmatmul.mubr.msk.f32.gmra.mxu1 %vm2037_vm11, %v2024_v47 }
 0x24a   : > { %837 = vst.msk [vmem:[#allocation3 + $0xd8] sm:$0xff] %vm809_vm4, %v768_v23 }
 0x24b   : > { %v1535_v56 = vpop.permute.xlu1 %1534 }
 0x24c   : > { %1607 = vst.msk [vmem:[#allocation3 + $0xc0] sm:$0xff] %vm1582_vm8, %v1535_v56  ;;  %v1537_v51 = vpop.permute.xlu0 %1536 }
 0x24d   : > { %1608 = vst.msk [vmem:[#allocation3 + $0xc8] sm:$0xff] %vm1582_vm8, %v1537_v51 }
 0x24f   : > { %v959_v24 = vpop.permute.xlu1 %958 }
 0x250   : > { %1029 = vst.msk [vmem:[#allocation3 + $0xd0] sm:$0xff] %vm1002_vm5, %v959_v24  ;;  %v961_v28 = vpop.permute.xlu0 %960 }
 0x251   : > { %1030 = vst.msk [vmem:[#allocation3 + $0xd8] sm:$0xff] %vm1002_vm5, %v961_v28 }
 0x253   : > { %v1728_v30 = vpop.permute.xlu1 %1727 }
 0x254   : > { %1800 = vst.msk [vmem:[#allocation3 + $0xc0] sm:$0xff] %vm1775_vm9, %v1728_v30  ;;  %v1730_v53 = vpop.permute.xlu0 %1729 }
 0x255   : > { %1801 = vst.msk [vmem:[#allocation3 + $0xc8] sm:$0xff] %vm1775_vm9, %v1730_v53 }
 0x257   : > { %v1152_v29 = vpop.permute.xlu1 %1151 }
 0x258   : > { %1222 = vst.msk [vmem:[#allocation3 + $0xd0] sm:$0xff] %vm1195_vm6, %v1152_v29  ;;  %v1154_v33 = vpop.permute.xlu0 %1153 }
 0x259   : > { %1223 = vst.msk [vmem:[#allocation3 + $0xd8] sm:$0xff] %vm1195_vm6, %v1154_v33 }
 0x25b   : > { %v1921_v34 = vpop.permute.xlu1 %1920 }
 0x25c   : > { %1993 = vst.msk [vmem:[#allocation3 + $0xc0] sm:$0xff] %vm1968_vm10, %v1921_v34  ;;  %v1923_v59 = vpop.permute.xlu0 %1922 }
 0x25d   : > { %1994 = vst.msk [vmem:[#allocation3 + $0xc8] sm:$0xff] %vm1968_vm10, %v1923_v59 }
 0x25f   : > { %v1345_v62 = vpop.permute.xlu1 %1344 }
 0x260   : > { %1415 = vst.msk [vmem:[#allocation3 + $0xd0] sm:$0xff] %vm1388_vm7, %v1345_v62  ;;  %v1347_v38 = vpop.permute.xlu0 %1346 }
 0x261   : > { %1416 = vst.msk [vmem:[#allocation3 + $0xd8] sm:$0xff] %vm1388_vm7, %v1347_v38  ;;  %v4094_v1 = vpop.f32.mrf.mxu0 }
 0x262   : > { %2581 = vst.msk [vmem:[%s3933_s24 + $0x58] sm:$0xff] %vm2363_vm12, %v4094_v1 }
 0x263   : > { %v770_v35 = vpop.permute.xlu1 %769  ;;  %v2025_v18 = vld [vmem:[#allocation3 + $0xc0] sm:$0xff]  ;;  %v4100_v6 = vpop.f32.mrf.mxu0 }
 0x264   : > { %838 = vst.msk [vmem:[#allocation3 + $0xe0] sm:$0xff] %vm809_vm4, %v770_v35  ;;  %2875 = vmatprep.mubr.msk.f32.mxu1 %vm2037_vm11, %v2025_v18  ;;  %v772_v37 = vpop.permute.xlu0 %771  ;;  %v2026_v52 = vld [vmem:[#allocation3 + $0xc8] sm:$0xff] }
 0x265   : > { %2580 = vst.msk [vmem:[%s3933_s24 + $0x50] sm:$0xff] %vm2363_vm12, %v4100_v6  ;;  %2876 = vmatmul.mubr.msk.f32.gmra.mxu1 %vm2037_vm11, %v2026_v52  ;;  %v2365_v52 = vsel %vm2363_vm12, %v3937_v17, 0.0 }
 0x266   : > { %839 = vst.msk [vmem:[#allocation3 + $0xe8] sm:$0xff] %vm809_vm4, %v772_v37  ;;  %v2364_v37 = vsel %vm2363_vm12, %v3944_v58, 0.0 }
 0x267   : > { %v1539_v50 = vpop.permute.xlu1 %1538 }
 0x268   : > { %1609 = vst.msk [vmem:[#allocation3 + $0xd0] sm:$0xff] %vm1582_vm8, %v1539_v50  ;;  %v1541_v5 = vpop.permute.xlu0 %1540  ;;  %v2367_v50 = vsel %vm2363_vm12, %v3980_v22, 0.0 }
 0x269   : > { %1610 = vst.msk [vmem:[#allocation3 + $0xd8] sm:$0xff] %vm1582_vm8, %v1541_v5  ;;  %v2366_v5 = vadd.f32 %v2365_v52, %v2364_v37 }
 0x26b   : > { %v963_v46 = vpop.permute.xlu1 %962 }
 0x26c   : > { %1031 = vst.msk [vmem:[#allocation3 + $0xe0] sm:$0xff] %vm1002_vm5, %v963_v46  ;;  %v965_v32 = vpop.permute.xlu0 %964  ;;  %v2368_v46 = vadd.f32 %v2367_v50, %v2366_v5 }
 0x26d   : > { %1032 = vst.msk [vmem:[#allocation3 + $0xe8] sm:$0xff] %vm1002_vm5, %v965_v32  ;;  %v2369_v32 = vsel %vm2363_vm12, %v3973_v31, 0.0 }
 0x26f   : > { %v1732_v55 = vpop.permute.xlu1 %1731 }
 0x270   : > { %1802 = vst.msk [vmem:[#allocation3 + $0xd0] sm:$0xff] %vm1775_vm9, %v1732_v55  ;;  %v1734_v49 = vpop.permute.xlu0 %1733  ;;  %v2371_v55 = vsel %vm2363_vm12, %v4016_v39, 0.0 }
 0x271   : > { %1803 = vst.msk [vmem:[#allocation3 + $0xd8] sm:$0xff] %vm1775_vm9, %v1734_v49  ;;  %v2370_v49 = vadd.f32 %v2369_v32, %v2368_v46 }
 0x273   : > { %v1156_v7 = vpop.permute.xlu1 %1155 }
 0x274   : > { %1224 = vst.msk [vmem:[#allocation3 + $0xe0] sm:$0xff] %vm1195_vm6, %v1156_v7  ;;  %v1158_v11 = vpop.permute.xlu0 %1157  ;;  %v2372_v7 = vadd.f32 %v2371_v55, %v2370_v49 }
 0x275   : > { %1225 = vst.msk [vmem:[#allocation3 + $0xe8] sm:$0xff] %vm1195_vm6, %v1158_v11 }
 0x277   : > { %v1925_v41 = vpop.permute.xlu1 %1924 }
 0x278   : > { %1995 = vst.msk [vmem:[#allocation3 + $0xd0] sm:$0xff] %vm1968_vm10, %v1925_v41  ;;  %v1927_v12 = vpop.permute.xlu0 %1926 }
 0x279   : > { %1996 = vst.msk [vmem:[#allocation3 + $0xd8] sm:$0xff] %vm1968_vm10, %v1927_v12  ;;  %v2373_v12 = vsel %vm2363_vm12, %v4009_v36, 0.0 }
 0x27b   : > { %v1349_v13 = vpop.permute.xlu1 %1348 }
 0x27c   : > { %1417 = vst.msk [vmem:[#allocation3 + $0xe0] sm:$0xff] %vm1388_vm7, %v1349_v13  ;;  %v1351_v61 = vpop.permute.xlu0 %1350  ;;  %v2375_v13 = vsel %vm2363_vm12, %v4052_v26, 0.0 }
 0x27d   : > { %1418 = vst.msk [vmem:[#allocation3 + $0xe8] sm:$0xff] %vm1388_vm7, %v1351_v61  ;;  %v4120_v15 = vpop.f32.mrf.mxu0  ;;  %v2374_v61 = vadd.f32 %v2373_v12, %v2372_v7 }
 0x27e   : > { %2583 = vst.msk [vmem:[%s3933_s24 + $0x68] sm:$0xff] %vm2363_vm12, %v4120_v15 }
 0x27f   : > { %v774_v0 = vpop.permute.xlu1 %773  ;;  %v2027_v54 = vld [vmem:[#allocation3 + $0xd0] sm:$0xff]  ;;  %v4126_v4 = vpop.f32.mrf.mxu0 }
 0x280   : > { %840 = vst.msk [vmem:[#allocation3 + $0xf0] sm:$0xff] %vm809_vm4, %v774_v0  ;;  %2878 = vmatprep.mubr.msk.f32.mxu1 %vm2037_vm11, %v2027_v54  ;;  %v776_v3 = vpop.permute.xlu0 %775  ;;  %v2028_v10 = vld [vmem:[#allocation3 + $0xd8] sm:$0xff]  ;;  %v2376_v0 = vadd.f32 %v2375_v13, %v2374_v61  ;;  %v2377_v54 = vsel %vm2363_vm12, %v4045_v9, 0.0 }
 0x281   : > { %2582 = vst.msk [vmem:[%s3933_s24 + $0x60] sm:$0xff] %vm2363_vm12, %v4126_v4  ;;  %2879 = vmatmul.mubr.msk.f32.gmra.mxu1 %vm2037_vm11, %v2028_v10 }
 0x282   : > { %841 = vst.msk [vmem:[#allocation3 + $0xf8] sm:$0xff] %vm809_vm4, %v776_v3  ;;  %v2379_v3 = vsel %vm2363_vm12, %v4074_v21, 0.0  ;;  %v2378_v10 = vadd.f32 %v2377_v54, %v2376_v0 }
 0x283   : > { %v1543_v25 = vpop.permute.xlu1 %1542 }
 0x284   : > { %1611 = vst.msk [vmem:[#allocation3 + $0xe0] sm:$0xff] %vm1582_vm8, %v1543_v25  ;;  %v1545_v40 = vpop.permute.xlu0 %1544  ;;  %v2380_v25 = vadd.f32 %v2379_v3, %v2378_v10 }
 0x285   : > { %1612 = vst.msk [vmem:[#allocation3 + $0xe8] sm:$0xff] %vm1582_vm8, %v1545_v40  ;;  %v2381_v40 = vsel %vm2363_vm12, %v4068_v8, 0.0 }
 0x287   : > { %v967_v27 = vpop.permute.xlu1 %966 }
 0x288   : > { %1033 = vst.msk [vmem:[#allocation3 + $0xf0] sm:$0xff] %vm1002_vm5, %v967_v27  ;;  %v969_v42 = vpop.permute.xlu0 %968  ;;  %v2383_v27 = vsel %vm2363_vm12, %v4100_v6, 0.0 }
 0x289   : > { %1034 = vst.msk [vmem:[#allocation3 + $0xf8] sm:$0xff] %vm1002_vm5, %v969_v42  ;;  %v2382_v42 = vadd.f32 %v2381_v40, %v2380_v25 }
 0x28b   : > { %v1736_v16 = vpop.permute.xlu1 %1735 }
 0x28c   : > { %1804 = vst.msk [vmem:[#allocation3 + $0xe0] sm:$0xff] %vm1775_vm9, %v1736_v16  ;;  %v1738_v43 = vpop.permute.xlu0 %1737  ;;  %v2384_v16 = vadd.f32 %v2383_v27, %v2382_v42 }
 0x28d   : > { %1805 = vst.msk [vmem:[#allocation3 + $0xe8] sm:$0xff] %vm1775_vm9, %v1738_v43  ;;  %v2385_v43 = vsel %vm2363_vm12, %v4094_v1, 0.0 }
 0x28f   : > { %v1160_v48 = vpop.permute.xlu1 %1159 }
 0x290   : > { %1226 = vst.msk [vmem:[#allocation3 + $0xf0] sm:$0xff] %vm1195_vm6, %v1160_v48  ;;  %v1162_v44 = vpop.permute.xlu0 %1161  ;;  %v2387_v48 = vsel %vm2363_vm12, %v4126_v4, 0.0 }
 0x291   : > { %1227 = vst.msk [vmem:[#allocation3 + $0xf8] sm:$0xff] %vm1195_vm6, %v1162_v44  ;;  %v2386_v44 = vadd.f32 %v2385_v43, %v2384_v16 }
 0x293   : > { %v1929_v45 = vpop.permute.xlu1 %1928 }
 0x294   : > { %1997 = vst.msk [vmem:[#allocation3 + $0xe0] sm:$0xff] %vm1968_vm10, %v1929_v45  ;;  %v1931_v19 = vpop.permute.xlu0 %1930  ;;  %v2388_v45 = vadd.f32 %v2387_v48, %v2386_v44 }
 0x295   : > { %1998 = vst.msk [vmem:[#allocation3 + $0xe8] sm:$0xff] %vm1968_vm10, %v1931_v19  ;;  %v2389_v19 = vsel %vm2363_vm12, %v4120_v15, 0.0 }
 0x297   : > { %v1353_v20 = vpop.permute.xlu1 %1352 }
 0x298   : > { %1419 = vst.msk [vmem:[#allocation3 + $0xf0] sm:$0xff] %vm1388_vm7, %v1353_v20  ;;  %v1547_v57 = vpop.permute.xlu0 %1546 }
 0x299   : > { %v4145_v60 = vpop.f32.mrf.mxu0  ;;  %1613 = vst.msk [vmem:[#allocation3 + $0xf0] sm:$0xff] %vm1582_vm8, %v1547_v57  ;;  %v2390_v57 = vadd.f32 %v2389_v19, %v2388_v45 }
 0x29a   : > { %2585 = vst.msk [vmem:[%s3933_s24 + $0x78] sm:$0xff] %vm2363_vm12, %v4145_v60 }
 0x29b   : > { %v1355_v63 = vpop.permute.xlu1 %1354  ;;  %v2029_v14 = vld [vmem:[#allocation3 + $0xe0] sm:$0xff]  ;;  %v4152_v2 = vpop.f32.mrf.mxu0 }
 0x29c   : > { %1420 = vst.msk [vmem:[#allocation3 + $0xf8] sm:$0xff] %vm1388_vm7, %v1355_v63  ;;  %2881 = vmatprep.mubr.msk.f32.mxu1 %vm2037_vm11, %v2029_v14  ;;  %v2030_v23 = vld [vmem:[#allocation3 + $0xe8] sm:$0xff]  ;;  %v1740_v47 = vpop.permute.xlu0 %1739  ;;  %v2391_v20 = vsel %vm2363_vm12, %v4152_v2, 0.0 }
 0x29d   : > { %2584 = vst.msk [vmem:[%s3933_s24 + $0x70] sm:$0xff] %vm2363_vm12, %v4152_v2  ;;  %2882 = vmatmul.mubr.msk.f32.gmra.mxu1 %vm2037_vm11, %v2030_v23  ;;  %v2392_v14 = vadd.f32 %v2391_v20, %v2390_v57 }
 0x29e   : > { %1806 = vst.msk [vmem:[#allocation3 + $0xf0] sm:$0xff] %vm1775_vm9, %v1740_v47  ;;  %v2393_v47 = vsel %vm2363_vm12, %v4145_v60, 0.0 }
 0x29f   : > { %v1549_v56 = vpop.permute.xlu1 %1548 }
 0x2a0   : > { %1614 = vst.msk [vmem:[#allocation3 + $0xf8] sm:$0xff] %vm1582_vm8, %v1549_v56  ;;  %v1933_v51 = vpop.permute.xlu0 %1932 }
 0x2a1   : > { %1999 = vst.msk [vmem:[#allocation3 + $0xf0] sm:$0xff] %vm1968_vm10, %v1933_v51  ;;  %v2394_v51 = vadd.f32 %v2393_v47, %v2392_v14 }
 0x2a3   : > { %v1742_v24 = vpop.permute.xlu1 %1741 }
 0x2a4   : > { %1807 = vst.msk [vmem:[#allocation3 + $0xf8] sm:$0xff] %vm1775_vm9, %v1742_v24 }
 0x2a7   : > { %v1935_v28 = vpop.permute.xlu1 %1934 }
 0x2a8   : > { %2000 = vst.msk [vmem:[#allocation3 + $0xf8] sm:$0xff] %vm1968_vm10, %v1935_v28  ;;  %v2031_v30 = vld [vmem:[#allocation3 + $0xf0] sm:$0xff] }
 0x2a9   : > { %2884 = vmatprep.mubr.msk.f32.mxu1 %vm2037_vm11, %v2031_v30 }
 0x2af   : > { %v2032_v53 = vld [vmem:[#allocation3 + $0xf8] sm:$0xff] }
 0x2b0   : > { %2885 = vmatmul.mubr.msk.f32.gmra.mxu1 %vm2037_vm11, %v2032_v53 }
 0x2b5   : > { %v4166_v29 = vpop.f32.mrf.mxu1 }
 0x2b6   : > { %2587 = vst.msk [vmem:[%s3933_s24 + $0x88] sm:$0xff] %vm2363_vm12, %v4166_v29  ;;  %v2397_v28 = vsel %vm2363_vm12, %v4166_v29, 0.0 }
 0x2b7   : > { %v4171_v33 = vpop.f32.mrf.mxu1 }
 0x2b8   : > { %2586 = vst.msk [vmem:[%s3933_s24 + $0x80] sm:$0xff] %vm2363_vm12, %v4171_v33  ;;  %v2395_v56 = vsel %vm2363_vm12, %v4171_v33, 0.0 }
 0x2b9   : > { %v2396_v24 = vadd.f32 %v2395_v56, %v2394_v51 }
 0x2bb   : > { %v2398_v53 = vadd.f32 %v2397_v28, %v2396_v24 }
 0x2d1   : > { %v4176_v34 = vpop.f32.mrf.mxu1 }
 0x2d2   : > { %2589 = vst.msk [vmem:[%s3933_s24 + $0x98] sm:$0xff] %vm2363_vm12, %v4176_v34  ;;  %v2401_v52 = vsel %vm2363_vm12, %v4176_v34, 0.0 }
 0x2d3   : > { %v4181_v59 = vpop.f32.mrf.mxu1 }
 0x2d4   : > { %2588 = vst.msk [vmem:[%s3933_s24 + $0x90] sm:$0xff] %vm2363_vm12, %v4181_v59  ;;  %v2399_v30 = vsel %vm2363_vm12, %v4181_v59, 0.0 }
 0x2d5   : > { %v2400_v37 = vadd.f32 %v2399_v30, %v2398_v53 }
 0x2d7   : > { %v2402_v5 = vadd.f32 %v2401_v52, %v2400_v37 }
 0x2ed   : > { %v4186_v62 = vpop.f32.mrf.mxu1 }
 0x2ee   : > { %2591 = vst.msk [vmem:[%s3933_s24 + $0xa8] sm:$0xff] %vm2363_vm12, %v4186_v62  ;;  %v2405_v32 = vsel %vm2363_vm12, %v4186_v62, 0.0 }
 0x2ef   : > { %v4191_v38 = vpop.f32.mrf.mxu1 }
 0x2f0   : > { %2590 = vst.msk [vmem:[%s3933_s24 + $0xa0] sm:$0xff] %vm2363_vm12, %v4191_v38  ;;  %v2403_v50 = vsel %vm2363_vm12, %v4191_v38, 0.0 }
 0x2f1   : > { %v2404_v46 = vadd.f32 %v2403_v50, %v2402_v5 }
 0x2f3   : > { %v2406_v49 = vadd.f32 %v2405_v32, %v2404_v46 }
 0x309   : > { %v4196_v35 = vpop.f32.mrf.mxu1 }
 0x30a   : > { %2593 = vst.msk [vmem:[%s3933_s24 + $0xb8] sm:$0xff] %vm2363_vm12, %v4196_v35  ;;  %v2409_v12 = vsel %vm2363_vm12, %v4196_v35, 0.0 }
 0x30b   : > { %v4201_v18 = vpop.f32.mrf.mxu1 }
 0x30c   : > { %2592 = vst.msk [vmem:[%s3933_s24 + $0xb0] sm:$0xff] %vm2363_vm12, %v4201_v18  ;;  %v2407_v55 = vsel %vm2363_vm12, %v4201_v18, 0.0 }
 0x30d   : > { %v2408_v7 = vadd.f32 %v2407_v55, %v2406_v49 }
 0x30f   : > { %v2410_v0 = vadd.f32 %v2409_v12, %v2408_v7 }
 0x325   : > { %v4216_v11 = vpop.f32.mrf.mxu1 }
 0x326   : > { %2595 = vst.msk [vmem:[%s3933_s24 + $0xc8] sm:$0xff] %vm2363_vm12, %v4216_v11  ;;  %v2413_v10 = vsel %vm2363_vm12, %v4216_v11, 0.0 }
 0x327   : > { %v4221_v41 = vpop.f32.mrf.mxu1 }
 0x328   : > { %2594 = vst.msk [vmem:[%s3933_s24 + $0xc0] sm:$0xff] %vm2363_vm12, %v4221_v41  ;;  %v2411_v61 = vsel %vm2363_vm12, %v4221_v41, 0.0 }
 0x329   : > { %v2412_v3 = vadd.f32 %v2411_v61, %v2410_v0 }
 0x32b   : > { %v2414_v40 = vadd.f32 %v2413_v10, %v2412_v3 }
 0x341   : > { %v4246_v63 = vpop.f32.mrf.mxu1 }
 0x342   : > { %2597 = vst.msk [vmem:[%s3933_s24 + $0xd8] sm:$0xff] %vm2363_vm12, %v4246_v63  ;;  %v2417_v42 = vsel %vm2363_vm12, %v4246_v63, 0.0 }
 0x343   : > { %v4251_v23 = vpop.f32.mrf.mxu1 }
 0x344   : > { %2596 = vst.msk [vmem:[%s3933_s24 + $0xd0] sm:$0xff] %vm2363_vm12, %v4251_v23  ;;  %v2415_v25 = vsel %vm2363_vm12, %v4251_v23, 0.0 }
 0x345   : > { %v2416_v27 = vadd.f32 %v2415_v25, %v2414_v40 }
 0x347   : > { %v2418_v43 = vadd.f32 %v2417_v42, %v2416_v27 }
 0x35d   : > { %v4274_v13 = vpop.f32.mrf.mxu1 }
 0x35e   : > { %2599 = vst.msk [vmem:[%s3933_s24 + $0xe8] sm:$0xff] %vm2363_vm12, %v4274_v13  ;;  %v2421_v44 = vsel %vm2363_vm12, %v4274_v13, 0.0 }
 0x35f   : > { %v2344_v54 = vpop.f32.mrf.mxu1 }
 0x360   : > { %2598 = vst.msk [vmem:[%s3933_s24 + $0xe0] sm:$0xff] %vm2363_vm12, %v2344_v54  ;;  %v2419_v16 = vsel %vm2363_vm12, %v2344_v54, 0.0 }
 0x361   : > { %v2420_v48 = vadd.f32 %v2419_v16, %v2418_v43 }
 0x363   : > { %v2422_v20 = vadd.f32 %v2421_v44, %v2420_v48 }
 0x370   : > { %v2886_v45 = vpop.f32.mrf.mxu1 }
 0x371   : > { %2601 = vst.msk [vmem:[%s3933_s24 + $0xf8] sm:$0xff] %vm2363_vm12, %v2886_v45  ;;  %v2425_v47 = vsel %vm2363_vm12, %v2886_v45, 0.0 }
 0x372   : > { %v2354_v19 = vpop.f32.mrf.mxu1 }
 0x373   : > { %v2423_v57 = vsel %vm2363_vm12, %v2354_v19, 0.0  ;;  %2600 = vst.msk [vmem:[%s3933_s24 + $0xf0] sm:$0xff] %vm2363_vm12, %v2354_v19 }
 0x374   : > { %v2424_v14 = vadd.f32 %v2423_v57, %v2422_v20 }
 0x376   : > { %v2426_v56 = vadd.f32 %v2425_v47, %v2424_v14 }
 0x378   : > { %v2427_v51 = vrot.slane %v2426_v56, 4 }
 0x37a   : > { %v2428_v24 = vadd.f32 %v2427_v51, %v2426_v56 }
 0x37c   : > { %v2429_v28 = vrot.slane %v2428_v24, 2 }
 0x37e   : > { %v2430_v30 = vadd.f32 %v2429_v28, %v2428_v24 }
 0x380   : > { %v2431_v53 = vrot.slane %v2430_v30, 1 }
 0x382   : > { %v2432_v37 = vadd.f32 %v2431_v53, %v2430_v30 }
 0x384   : > { %v4303_v52 = vmul.f32 0.00390625, %v2432_v37 }
 0x386   : > { %2467 = vst.msk [vmem:[%s254_s13] sm:$0x1] %vm2466_vm13, %v4303_v52 }
 0x387   : > { %2961 = shalt.err (!%p2958_p3)
}
 0x388   : > { %s2962_s12 = scalar_lea.hbm %s2625_s17, 16  ;;  %s2966_s20 = scalar_lea.hbm %s4476_s5, 32 }
 0x389   : > { %p2963_p4 = scmp.ne.s32.totalorder %s2625_s17, %s2962_s12  ;;  %p2967_p9 = scmp.lt.s32.totalorder %s2625_s17, %s4476_s5 }
 0x38a   : > { %p2968_p10 = scmp.lt.s32.totalorder %s2966_s20, %s2962_s12 }
 0x38b   : > { %p2964_p7 = pnand %p2963_p4, %p3124_p5 }
 0x38c   : > { %p2969_p11 = por %p2968_p10, %p2967_p9 }
 0x38d   : > { %p2965_p8 = pneg %p2964_p7 }
 0x38f   : > { %p2970_p12 = pnand %p2969_p11, %p2965_p8 }
 0x391   : > { %2973 = shalt.err (!%p2970_p12)
}
 0x392   : > { %2895 = dma.vmem_to_hbm [thread:$0]  (%p3124_p5), %s2628_s14, 16, %s2625_s17, %s2608_s18   ;;  %v4326_v50 = vsub.f32 %v2344_v54, %v4303_v52  ;;  %v4330_v5 = vsub.f32 %v4274_v13, %v4303_v52  ;;  %v4333_v46 = vsub.f32 %v2354_v19, %v4303_v52  ;;  %v4336_v32 = vsub.f32 %v2886_v45, %v4303_v52 }
 0x393   : > { %v2434_v55 = vsub.f32 %v3944_v58, %v4303_v52  ;;  %v2435_v49 = vsub.f32 %v3937_v17, %v4303_v52  ;;  %v2436_v7 = vsub.f32 %v3980_v22, %v4303_v52  ;;  %v2437_v12 = vsub.f32 %v3973_v31, %v4303_v52  ;;  %s260_s14 = scalar_lea.vmem [#allocation6], %s4299_s7  ;;  %s2638_s18 = scalar_lea.hbm %s4477_s6, %s2789_s8 }
 0x394   : > { %v2438_v0 = vsub.f32 %v4016_v39, %v4303_v52  ;;  %v2439_v3 = vsub.f32 %v4009_v36, %v4303_v52  ;;  %v2440_v22 = vsub.f32 %v4052_v26, %v4303_v52  ;;  %v2441_v39 = vsub.f32 %v4045_v9, %v4303_v52  ;;  %s2640_s15 = sshll.u32 %s260_s14, 4  ;;  %s2612_s26 = scalar_lea.sflag [#allocation7], %s4299_s7  ;;  %s2641_s15 = int_to_ptr.vmem [resolvable:$true] %s2640_s15 }
 0x395   : > { %v2468_v13 = vmul.f32 %v2434_v55, %v2434_v55  ;;  %v2469_v61 = vmul.f32 %v2435_v49, %v2435_v49  ;;  %v2470_v54 = vmul.f32 %v2436_v7, %v2436_v7  ;;  %v2471_v10 = vmul.f32 %v2437_v12, %v2437_v12  ;;  %s2974_s27 = scalar_lea.vmem %s2641_s15, 16  ;;  %s3050_s9 = smov [#allocation6]  }
 0x396   : > { %v2472_v40 = vmul.f32 %v2438_v0, %v2438_v0  ;;  %v2473_v42 = vmul.f32 %v2439_v3, %v2439_v3  ;;  %v2442_v43 = vsub.f32 %v4074_v21, %v4303_v52  ;;  %v2474_v48 = vmul.f32 %v2440_v22, %v2440_v22  ;;  %p2975_p13 = scmp.ne.s32.totalorder %s2641_s15, %s2974_s27  ;;  %s2978_s10 = sshll.u32 %s3050_s9, 4  ;;  %s2979_s10 = int_to_ptr.vmem [resolvable:$false] %s2978_s10 }
 0x397   : > { %v2500_v58 = vsel %vm2363_vm12, %v2468_v13, 0.0  ;;  %v2501_v17 = vsel %vm2363_vm12, %v2469_v61, 0.0  ;;  %v2503_v31 = vsel %vm2363_vm12, %v2470_v54, 0.0  ;;  %v2505_v16 = vsel %vm2363_vm12, %v2471_v10, 0.0  ;;  %s2980_s12 = scalar_lea.vmem %s2979_s10, 32  ;;  %p2981_p2 = scmp.lt.s32.totalorder %s2641_s15, %s2979_s10 }
 0x398   : > { %v2502_v25 = vadd.f32 %v2501_v17, %v2500_v58  ;;  %v2507_v44 = vsel %vm2363_vm12, %v2472_v40, 0.0  ;;  %v2443_v26 = vsub.f32 %v4068_v8, %v4303_v52  ;;  %v2475_v19 = vmul.f32 %v2441_v39, %v2441_v39  ;;  %p2976_p0 = pnand %p2975_p13, %p3124_p5  ;;  %p2982_p3 = scmp.lt.s32.totalorder %s2980_s12, %s2974_s27 }
 0x399   : > { %v2509_v20 = vsel %vm2363_vm12, %v2473_v42, 0.0  ;;  %v2444_v9 = vsub.f32 %v4100_v6, %v4303_v52  ;;  %v2476_v14 = vmul.f32 %v2442_v43, %v2442_v43  ;;  %v2511_v47 = vsel %vm2363_vm12, %v2474_v48, 0.0 }
 0x39a   : > { %v2504_v27 = vadd.f32 %v2503_v31, %v2502_v25  ;;  %v2445_v21 = vsub.f32 %v4094_v1, %v4303_v52  ;;  %v2477_v51 = vmul.f32 %v2443_v26, %v2443_v26  ;;  %v2513_v24 = vsel %vm2363_vm12, %v2475_v19, 0.0  ;;  %p2977_p1 = pneg %p2976_p0  ;;  %p2983_p4 = por %p2982_p3, %p2981_p2 }
 0x39b   : > { %v2446_v8 = vsub.f32 %v4126_v4, %v4303_v52  ;;  %v2478_v30 = vmul.f32 %v2444_v9, %v2444_v9  ;;  %v2515_v53 = vsel %vm2363_vm12, %v2476_v14, 0.0  ;;  %v2447_v6 = vsub.f32 %v4120_v15, %v4303_v52 }
 0x39c   : > { %v2506_v36 = vadd.f32 %v2505_v16, %v2504_v27  ;;  %v2479_v55 = vmul.f32 %v2445_v21, %v2445_v21  ;;  %v2517_v49 = vsel %vm2363_vm12, %v2477_v51, 0.0  ;;  %v2448_v1 = vsub.f32 %v4152_v2, %v4303_v52  ;;  %p2984_p7 = pnand %p2983_p4, %p2977_p1 }
 0x39d   : > { %v2480_v12 = vmul.f32 %v2446_v8, %v2446_v8  ;;  %v2519_v13 = vsel %vm2363_vm12, %v2478_v30, 0.0  ;;  %v2449_v4 = vsub.f32 %v4145_v60, %v4303_v52  ;;  %v2481_v0 = vmul.f32 %v2447_v6, %v2447_v6 }
 0x39e   : > { %v2508_v45 = vadd.f32 %v2507_v44, %v2506_v36  ;;  %v2521_v54 = vsel %vm2363_vm12, %v2479_v55, 0.0  ;;  %v2450_v15 = vsub.f32 %v4171_v33, %v4303_v52  ;;  %v2482_v10 = vmul.f32 %v2448_v1, %v2448_v1 }
 0x39f   : > { %v2523_v58 = vsel %vm2363_vm12, %v2480_v12, 0.0  ;;  %v2451_v2 = vsub.f32 %v4166_v29, %v4303_v52  ;;  %v2483_v25 = vmul.f32 %v2449_v4, %v2449_v4  ;;  %v2525_v22 = vsel %vm2363_vm12, %v2481_v0, 0.0 }
 0x3a0   : > { %v2510_v57 = vadd.f32 %v2509_v20, %v2508_v45  ;;  %v2452_v60 = vsub.f32 %v4181_v59, %v4303_v52  ;;  %v2484_v31 = vmul.f32 %v2450_v15, %v2450_v15  ;;  %v2527_v27 = vsel %vm2363_vm12, %v2482_v10, 0.0 }
 0x3a1   : > { %v2453_v33 = vsub.f32 %v4176_v34, %v4303_v52  ;;  %v2485_v42 = vmul.f32 %v2451_v2, %v2451_v2  ;;  %v2529_v16 = vsel %vm2363_vm12, %v2483_v25, 0.0  ;;  %v2454_v29 = vsub.f32 %v4191_v38, %v4303_v52 }
 0x3a2   : > { %v2512_v56 = vadd.f32 %v2511_v47, %v2510_v57  ;;  %v2486_v43 = vmul.f32 %v2452_v60, %v2452_v60  ;;  %v2531_v48 = vsel %vm2363_vm12, %v2484_v31, 0.0  ;;  %v2455_v59 = vsub.f32 %v4186_v62, %v4303_v52 }
 0x3a3   : > { %v2487_v45 = vmul.f32 %v2453_v33, %v2453_v33  ;;  %v2533_v26 = vsel %vm2363_vm12, %v2485_v42, 0.0  ;;  %v2456_v34 = vsub.f32 %v4201_v18, %v4303_v52  ;;  %v2488_v20 = vmul.f32 %v2454_v29, %v2454_v29 }
 0x3a4   : > { %v2514_v28 = vadd.f32 %v2513_v24, %v2512_v56  ;;  %v2535_v57 = vsel %vm2363_vm12, %v2486_v43, 0.0  ;;  %v2457_v38 = vsub.f32 %v4196_v35, %v4303_v52  ;;  %v2489_v14 = vmul.f32 %v2455_v59, %v2455_v59 }
 0x3a5   : > { %v2537_v47 = vsel %vm2363_vm12, %v2487_v45, 0.0  ;;  %v2458_v62 = vsub.f32 %v4221_v41, %v4303_v52  ;;  %v2490_v21 = vmul.f32 %v2456_v34, %v2456_v34  ;;  %v2539_v51 = vsel %vm2363_vm12, %v2488_v20, 0.0 }
 0x3a6   : > { %v2516_v37 = vadd.f32 %v2515_v53, %v2514_v28  ;;  %v2459_v18 = vsub.f32 %v4216_v11, %v4303_v52  ;;  %v2491_v28 = vmul.f32 %v2457_v38, %v2457_v38  ;;  %v2541_v8 = vsel %vm2363_vm12, %v2489_v14, 0.0 }
 0x3a7   : > { %v2460_v35 = vsub.f32 %v4251_v23, %v4303_v52  ;;  %v2492_v53 = vmul.f32 %v2458_v62, %v2458_v62  ;;  %v2461_v41 = vsub.f32 %v4246_v63, %v4303_v52  ;;  %v2496_v23 = vmul.f32 %v4326_v50, %v4326_v50 }
 0x3a8   : > { %v2518_v7 = vadd.f32 %v2517_v49, %v2516_v37  ;;  %v2543_v37 = vsel %vm2363_vm12, %v2490_v21, 0.0  ;;  %v2493_v55 = vmul.f32 %v2459_v18, %v2459_v18  ;;  %v2545_v49 = vsel %vm2363_vm12, %v2491_v28, 0.0 }
 0x3a9   : > { %v2494_v1 = vmul.f32 %v2460_v35, %v2460_v35  ;;  %v2547_v11 = vsel %vm2363_vm12, %v2492_v53, 0.0  ;;  %v2497_v63 = vmul.f32 %v4330_v5, %v4330_v5  ;;  %v2498_v15 = vmul.f32 %v4333_v46, %v4333_v46 }
 0x3aa   : > { %v2520_v61 = vadd.f32 %v2519_v13, %v2518_v7  ;;  %v2495_v13 = vmul.f32 %v2461_v41, %v2461_v41  ;;  %v2555_v10 = vsel %vm2363_vm12, %v2496_v23, 0.0  ;;  %v2499_v50 = vmul.f32 %v4336_v32, %v4336_v32 }
 0x3ab   : > { %v2551_v0 = vsel %vm2363_vm12, %v2494_v1, 0.0  ;;  %v2559_v5 = vsel %vm2363_vm12, %v2498_v15, 0.0 }
 0x3ac   : > { %v2522_v3 = vadd.f32 %v2521_v54, %v2520_v61  ;;  %v2549_v61 = vsel %vm2363_vm12, %v2493_v55, 0.0  ;;  %v2553_v52 = vsel %vm2363_vm12, %v2495_v13, 0.0 }
 0x3ae   : > { %v2524_v17 = vadd.f32 %v2523_v58, %v2522_v3 }
 0x3b0   : > { %v2526_v40 = vadd.f32 %v2525_v22, %v2524_v17  ;;  %v2557_v17 = vsel %vm2363_vm12, %v2497_v63, 0.0  ;;  %v2561_v22 = vsel %vm2363_vm12, %v2499_v50, 0.0 }
 0x3b2   : > { %v2528_v39 = vadd.f32 %v2527_v27, %v2526_v40 }
 0x3b4   : > { %v2530_v36 = vadd.f32 %v2529_v16, %v2528_v39 }
 0x3b6   : > { %v2532_v44 = vadd.f32 %v2531_v48, %v2530_v36 }
 0x3b8   : > { %v2534_v19 = vadd.f32 %v2533_v26, %v2532_v44 }
 0x3ba   : > { %v2536_v9 = vadd.f32 %v2535_v57, %v2534_v19 }
 0x3bc   : > { %v2538_v56 = vadd.f32 %v2537_v47, %v2536_v9 }
 0x3be   : > { %v2540_v24 = vadd.f32 %v2539_v51, %v2538_v56 }
 0x3c0   : > { %v2542_v30 = vadd.f32 %v2541_v8, %v2540_v24 }
 0x3c2   : > { %v2544_v6 = vadd.f32 %v2543_v37, %v2542_v30 }
 0x3c4   : > { %v2546_v7 = vadd.f32 %v2545_v49, %v2544_v6 }
 0x3c6   : > { %v2548_v12 = vadd.f32 %v2547_v11, %v2546_v7 }
 0x3c8   : > { %v2550_v4 = vadd.f32 %v2549_v61, %v2548_v12 }
 0x3ca   : > { %v2552_v54 = vadd.f32 %v2551_v0, %v2550_v4 }
 0x3cc   : > { %v2554_v3 = vadd.f32 %v2553_v52, %v2552_v54 }
 0x3ce   : > { %v2556_v58 = vadd.f32 %v2555_v10, %v2554_v3 }
 0x3d0   : > { %v2558_v2 = vadd.f32 %v2557_v17, %v2556_v58 }
 0x3d2   : > { %v2560_v25 = vadd.f32 %v2559_v5, %v2558_v2 }
 0x3d4   : > { %v2562_v40 = vadd.f32 %v2561_v22, %v2560_v25 }
 0x3d6   : > { %v2563_v60 = vrot.slane %v2562_v40, 4 }
 0x3d8   : > { %v2564_v46 = vadd.f32 %v2563_v60, %v2562_v40 }
 0x3da   : > { %v2565_v31 = vrot.slane %v2564_v46, 2 }
 0x3dc   : > { %v2566_v27 = vadd.f32 %v2565_v31, %v2564_v46 }
 0x3de   : > { %v2567_v39 = vrot.slane %v2566_v27, 1 }
 0x3e0   : > { %v2568_v33 = vadd.f32 %v2567_v39, %v2566_v27 }
 0x3e2   : > { %2569 = vst.msk [vmem:[%s260_s14] sm:$0x1] %vm2466_vm13, %v2568_v33 }
 0x3e3   : > { %2987 = shalt.err (!%p2984_p7)
}
 0x3e4   : > { %s2988_s23 = scalar_lea.hbm %s2638_s18, 16  ;;  %s2992_s19 = scalar_lea.hbm %s4477_s6, 32 }
 0x3e5   : > { %p2989_p8 = scmp.ne.s32.totalorder %s2638_s18, %s2988_s23  ;;  %p2993_p11 = scmp.lt.s32.totalorder %s2638_s18, %s4477_s6 }
 0x3e6   : > { %p2994_p12 = scmp.lt.s32.totalorder %s2992_s19, %s2988_s23 }
 0x3e7   : > { %p2990_p9 = pnand %p2989_p8, %p3124_p5 }
 0x3e8   : > { %p2995_p13 = por %p2994_p12, %p2993_p11 }
 0x3e9   : > { %p2991_p10 = pneg %p2990_p9 }
 0x3eb   : > { %p2996_p0 = pnand %p2995_p13, %p2991_p10 }
 0x3ed   : > { %2999 = shalt.err (!%p2996_p0)
}
 0x3ee   : > { %2896 = dma.vmem_to_hbm [thread:$0]  (%p3124_p5), %s2641_s15, 16, %s2638_s18, %s2612_s26  }
 0x3ef PF: > { %p2906_p1 = scmp.ge.s32.totalorder %s3038_s22, 2  ;;  %s2660_s24 = sand.u32 1, %s3026_s0  }
 0x3f0   : > { %s2661_s13 = scalar_lea.sflag [#allocation5], %s2660_s24 }
 0x3f1   : > { %p2900_p2 = pnand %p2906_p1, %p3128_p6 }
 0x3f3   : > { %p2901_p3 = pneg %p2900_p2 }
 0x3f5   : > { %3017 = dma.done.wait (%p2901_p3), %s2661_s13, 16  }
 0x3f6   : > { %3019 = vsyncadd (%p2901_p3), %s2661_s13, 4294967280  ;;  %s2669_s14 = scalar_lea.sflag [#allocation7], %s2660_s24 }
 0x3f7   : > { %3021 = dma.done.wait (%p2901_p3), %s2669_s14, 16  }
 0x3f8   : > { %3023 = vsyncadd (%p2901_p3), %s2669_s14, 4294967280  ;;  %p20_p5 = scmp.ge.s32.totalorder %s3111_s25, 4   ;;  %s4480_s0 = smov %s3030_s1 }
 0x3f9   : > { %s4481_s1 = smov %s3034_s21  ;;  %s4482_s21 = smov %s3122_s28 }
 0x3fa   : > { %s4483_s22 = smov %s3111_s25  ;;  %22 = sbr.rel (!%p20_p5) target bundleno = 5 (0x5), region = 102 }
 0x3ff   :  { %2673 = vsyncpa [#allocation5], 1 }
 0x400   :  { %2675 = vsyncpa [#allocation5 + $0x1], 1 }
 0x401   :  { %2676 = vsyncpa [#allocation7], 1 }
 0x402   :  { %2678 = vsyncpa [#allocation7 + $0x1], 1 }

</bundles_post_ra>
